<compile_context>
chip_gen: v5e
topology: v5e:2x2
jax: 0.10.0
libtpu: 0.0.40
codegen_flags: <defaults>
</compile_context>

<pallas_src>
import functools
import math

import jax
import jax.numpy as jnp
from jax.experimental import pallas as pl
from jax.experimental.pallas import tpu as pltpu


# ----------------------------------------------------------------------------
# Kernel
# ----------------------------------------------------------------------------
def _layernorm(x, gamma, beta, eps=1e-5):
    mu = jnp.mean(x, axis=-1, keepdims=True)
    var = jnp.mean((x - mu) ** 2, axis=-1, keepdims=True)
    return (x - mu) * jax.lax.rsqrt(var + eps) * gamma + beta


def _softmax_lastdim(s):
    s = s - jnp.max(s, axis=-1, keepdims=True)
    p = jnp.exp(s)
    return p * pl.reciprocal(jnp.sum(p, axis=-1, keepdims=True), approx=True)


def _fused_kernel(lang_ref, obj_ref, maskb_ref,
                  # node MHA (head-major Wq/Wk/Wv, full Wo)
                  nwq_ref, nwk_ref, nwv_ref, nbq_ref, nbk_ref, nbv_ref,
                  nwo_ref, nbo_ref,
                  # edge MHA
                  ewq_ref, ewk_ref, ewv_ref, ebq_ref, ebk_ref, ebv_ref,
                  ewo_ref, ebo_ref,
                  # layer norms: norme, normq, norm2
                  lne_g_ref, lne_b_ref, lnq_g_ref, lnq_b_ref, ln2_g_ref, ln2_b_ref,
                  # FFN (W1 pre-split host-side)
                  w1a_ref, w1b_ref, b1_ref, w2_ref, b2f_ref,
                  out_ref,
                  edge_acc, si_ref,
                  *, n_head, edge_chunk):
    f32 = jnp.float32
    lang = lang_ref[0]            # (L, dim)
    obj = obj_ref[0]              # (nobj, dim)
    mask_b = maskb_ref[0]         # (nobj, L) additive bias, 0 / -1e9
    L, dim = lang.shape
    nobj = obj.shape[0]
    mx = lang.dtype               # dtype fed to the MXU (f32 or bf16)

    def per_head_proj(x, w_h, b_h=None):
        # x: (R, dim); w_h: (n_head, dim, d_head)  -> (n_head, R, d_head)
        # Full-depth (dim) contraction per head; only weights are head-sliced.
        y = jnp.stack([jnp.dot(x, w_h[h], preferred_element_type=f32)
                       for h in range(n_head)], axis=0)
        return y if b_h is None else y + b_h

    def concat_heads(x_h):
        # (n_head, R, d_head) -> (R, dim): one lane concat, then a single
        # full-depth output-projection matmul (no (n_head, R, dim) intermediate).
        return jnp.concatenate([x_h[h] for h in range(n_head)], axis=-1)

    # ------------------ node branch: objects attend to language -------------
    qn = per_head_proj(obj, nwq_ref[...], nbq_ref[...])        # scale pre-folded
    kn = per_head_proj(lang, nwk_ref[...], nbk_ref[...])
    vn = per_head_proj(lang, nwv_ref[...], nbv_ref[...])
    sn = jnp.einsum('hne,hle->hnl', qn.astype(mx), kn.astype(mx),
                    preferred_element_type=f32) + mask_b[None]
    an = _softmax_lastdim(sn)
    on = jnp.einsum('hnl,hle->hne', an.astype(mx), vn.astype(mx),
                    preferred_element_type=f32)                 # (h, nobj, dh)
    node = (jnp.dot(concat_heads(on).astype(mx), nwo_ref[...],
                    preferred_element_type=f32) + nbo_ref[...]) # (nobj, dim)

    # ------------------ edge branch ------------------------------------------
    # lang K/V projected once and reused for all nobj^2 edge queries.
    ke = per_head_proj(lang, ewk_ref[...], ebk_ref[...])
    ve = per_head_proj(lang, ewv_ref[...], ebv_ref[...]).astype(mx)
    # Linearity: q(i,j) = qo[i] - qo[j] + bq  ->  scores decompose into an
    # i-term (bias folded) minus a j-term (mask folded).  Scale pre-folded.
    qo = per_head_proj(obj, ewq_ref[...])                       # (h, nobj, dh)
    s_i = jnp.einsum('hne,hle->hnl', (qo + ebq_ref[...]).astype(mx),
                     ke.astype(mx), preferred_element_type=f32)  # (h, nobj, L)
    s_j = jnp.einsum('hne,hle->hnl', qo.astype(mx), ke.astype(mx),
                     preferred_element_type=f32) - mask_b[None]
    si_ref[...] = s_i                                           # sliced per chunk
    ewo = ewo_ref[...]
    ebo = ebo_ref[...]

    C = edge_chunk
    n_chunks = nobj // C

    @pl.loop(0, n_chunks)
    def _edge_chunk(c):
        i0 = pl.multiple_of(c * C, C)
        si = si_ref[:, pl.ds(i0, C), :]                          # (h, C, L)
        s = si[:, :, None, :] - s_j[:, None, :, :]               # (h, C, nobj, L)
        p = _softmax_lastdim(s.reshape(n_head, C * nobj, L))
        pv = jnp.einsum('hql,hle->hqe', p.astype(mx), ve,
                        preferred_element_type=f32)              # (h, C*nobj, dh)
        e = (jnp.dot(concat_heads(pv).astype(mx), ewo,
                     preferred_element_type=f32) + ebo)          # (C*nobj, dim)
        # edge[i] = max_j e(i, j)  -- single sublane reduction per chunk.
        edge_acc[pl.ds(i0, C), :] = jnp.max(e.reshape(C, nobj, dim), axis=1)

    edge = edge_acc[...]                                         # (nobj, dim)

    # ------------------ combine (_forward) -----------------------------------
    xe = _layernorm((obj + edge).astype(f32), lne_g_ref[...], lne_b_ref[...])
    xn = _layernorm((obj + node).astype(f32), lnq_g_ref[...], lnq_b_ref[...])
    # relu(concat(xn, xe) @ W1 + b1) without the lane concat (W1 split host-side)
    h1 = jnp.maximum(
        jnp.dot(xn.astype(mx), w1a_ref[...], preferred_element_type=f32)
        + jnp.dot(xe.astype(mx), w1b_ref[...], preferred_element_type=f32)
        + b1_ref[...], 0.0)
    y = xn + jnp.dot(h1.astype(mx), w2_ref[...],
                     preferred_element_type=f32) + b2f_ref[...]
    out_ref[0] = _layernorm(y, ln2_g_ref[...], ln2_b_ref[...]).astype(out_ref.dtype)


# ----------------------------------------------------------------------------
# Wrapper
# ----------------------------------------------------------------------------
def _split_w_heads(w, n_head):
    din, dout = w.shape
    dh = dout // n_head
    return jnp.transpose(w.reshape(din, n_head, dh), (1, 0, 2))   # (h, din, dh)


def _split_b_heads(b, n_head):
    dh = b.shape[-1] // n_head
    return b.reshape(n_head, 1, dh)


def obj_edge_ga_forward(params, lang, obj, lang_mask, obj_mask, co_mask, *,
                        n_head, edge_chunk=None, compute_dtype=None):
    """Equivalent of ObjEdgeGaModule.forward(lang, obj, lang_mask, obj_mask, co_mask)."""
    del lang_mask, obj_mask                       # unused by the module
    N, L, dim = lang.shape
    nobj = obj.shape[1]
    assert dim % n_head == 0
    d_head = dim // n_head
    dim_ff = params['ffn_w1'].shape[1]
    out_dtype = obj.dtype

    if edge_chunk is None:
        edge_chunk = next(c for c in range(min(nobj, 8), 0, -1) if nobj % c == 0)
    assert nobj % edge_chunk == 0

    scale = 1.0 / math.sqrt(d_head)
    pn, pe = params['msa_node'], params['msa_edge']

    # Head-major Q/K/V weights; 1/sqrt(d_head) folded into the Q projection.
    nwq = _split_w_heads(pn['wq'] * scale, n_head)
    nbq = _split_b_heads(pn['bq'] * scale, n_head)
    nwk = _split_w_heads(pn['wk'], n_head)
    nbk = _split_b_heads(pn['bk'], n_head)
    nwv = _split_w_heads(pn['wv'], n_head)
    nbv = _split_b_heads(pn['bv'], n_head)
    ewq = _split_w_heads(pe['wq'] * scale, n_head)
    ebq = _split_b_heads(pe['bq'] * scale, n_head)
    ewk = _split_w_heads(pe['wk'], n_head)
    ebk = _split_b_heads(pe['bk'], n_head)
    ewv = _split_w_heads(pe['wv'], n_head)
    ebv = _split_b_heads(pe['bv'], n_head)
    nwo, nbo = pn['wo'], pn['bo']
    ewo, ebo = pe['wo'], pe['bo']

    # FFN first layer split so the kernel never concatenates (xn, xe).
    w1a = params['ffn_w1'][:dim]
    w1b = params['ffn_w1'][dim:]
    b1, w2, b2f = params['ffn_b1'], params['ffn_w2'], params['ffn_b2']

    # Masking as a precomputed additive bias (0 where attend, -1e9 where masked).
    mask_bias = (jnp.transpose(co_mask, (0, 2, 1)).astype(jnp.float32) - 1.0) * 1e9

    # Optional bf16 cast of MXU operands for v6e/v7x production runs (f32 acc
    # kept via preferred_element_type; norms / biases / mask stay f32).
    if compute_dtype is not None:
        cast = lambda x: x.astype(compute_dtype)
        lang, obj = cast(lang), cast(obj)
        nwq, nwk, nwv, nwo = cast(nwq), cast(nwk), cast(nwv), cast(nwo)
        ewq, ewk, ewv, ewo = cast(ewq), cast(ewk), cast(ewv), cast(ewo)
        w1a, w1b, w2 = cast(w1a), cast(w1b), cast(w2)

    perb = lambda s: pl.BlockSpec((1,) + s, lambda b: (b, 0, 0))

    def full(shape):
        nd = len(shape)
        return pl.BlockSpec(shape, lambda b, _n=nd: (0,) * _n)

    wh = full((n_head, dim, d_head))
    bh = full((n_head, 1, d_head))
    wdd = full((dim, dim))
    b1d = full((1, dim))

    kernel = functools.partial(_fused_kernel, n_head=n_head,
                               edge_chunk=edge_chunk)
    # TODO(synk): pipeline_mode=pl.Buffered(1) on the constant weight specs and
    # a second ("parallel") grid axis over edge chunks for v7x once the prod
    # VMEM budget requires it; not needed at these sizes.
    return pl.pallas_call(
        kernel,
        out_shape=jax.ShapeDtypeStruct((N, nobj, dim), out_dtype),
        grid=(N,),
        in_specs=[
            perb((L, dim)),                       # lang
            perb((nobj, dim)),                    # obj
            perb((nobj, L)),                      # additive mask bias
            # node MHA
            wh, wh, wh, bh, bh, bh, wdd, b1d,
            # edge MHA
            wh, wh, wh, bh, bh, bh, wdd, b1d,
            # layer norms: norme, normq, norm2
            b1d, b1d, b1d, b1d, b1d, b1d,
            # FFN
            full((dim, dim_ff)), full((dim, dim_ff)), full((1, dim_ff)),
            full((dim_ff, dim)), b1d,
        ],
        out_specs=perb((nobj, dim)),
        scratch_shapes=[
            pltpu.VMEM((nobj, dim), jnp.float32),         # running edge result
            pltpu.VMEM((n_head, nobj, L), jnp.float32),   # i-side scores
        ],
        compiler_params=pltpu.CompilerParams(
            dimension_semantics=("parallel",),
            vmem_limit_bytes=48 * 1024 * 1024),
    )(lang, obj, mask_bias,
      nwq, nwk, nwv, nbq, nbk, nbv, nwo, nbo,
      ewq, ewk, ewv, ebq, ebk, ebv, ewo, ebo,
      params['norme'][0], params['norme'][1],
      params['normq'][0], params['normq'][1],
      params['norm2'][0], params['norm2'][1],
      w1a, w1b, b1, w2, b2f)


# ----------------------------------------------------------------------------
# Deterministic parameter init (synthetic, no checkpoint)
# ----------------------------------------------------------------------------
def init_params(key, dim, dim_ff):
    ks = jax.random.split(key, 4)

    def lin(k, din, dout, scale=0.1):
        kw, kb = jax.random.split(k)
        return (scale * jax.random.normal(kw, (din, dout), jnp.float32),
                scale * jax.random.normal(kb, (1, dout), jnp.float32))

    def mha_params(k):
        kq, kk, kv, ko = jax.random.split(k, 4)
        p = {}
        p['wq'], p['bq'] = lin(kq, dim, dim)
        p['wk'], p['bk'] = lin(kk, dim, dim)
        p['wv'], p['bv'] = lin(kv, dim, dim)
        p['wo'], p['bo'] = lin(ko, dim, dim)
        return p

    params = {
        'msa_node': mha_params(ks[0]),
        'msa_edge': mha_params(ks[1]),
        'norme': (jnp.ones((1, dim), jnp.float32), jnp.zeros((1, dim), jnp.float32)),
        'normq': (jnp.ones((1, dim), jnp.float32), jnp.zeros((1, dim), jnp.float32)),
        'norm2': (jnp.ones((1, dim), jnp.float32), jnp.zeros((1, dim), jnp.float32)),
    }
    params['ffn_w1'], params['ffn_b1'] = lin(ks[2], 2 * dim, dim_ff)
    params['ffn_w2'], params['ffn_b2'] = lin(ks[3], dim_ff, dim)
    return params


# ----------------------------------------------------------------------------
# Pure-JAX reference (sanity check only)
# ----------------------------------------------------------------------------
def _ref_mha(q, kv, mask, p, n_head):
    B, Lq, dim = q.shape
    Lk = kv.shape[1]
    d = dim // n_head
    Q = (q @ p['wq'] + p['bq'][0]).reshape(B, Lq, n_head, d).transpose(0, 2, 1, 3)
    K = (kv @ p['wk'] + p['bk'][0]).reshape(B, Lk, n_head, d).transpose(0, 2, 1, 3)
    V = (kv @ p['wv'] + p['bv'][0]).reshape(B, Lk, n_head, d).transpose(0, 2, 1, 3)
    s = jnp.einsum('bhqd,bhkd->bhqk', Q, K) / math.sqrt(d)
    s = jnp.where(mask[:, None] > 0, s, -1e9)
    a = jax.nn.softmax(s, axis=-1)
    o = jnp.einsum('bhqk,bhkd->bhqd', a, V).transpose(0, 2, 1, 3).reshape(B, Lq, dim)
    return o @ p['wo'] + p['bo'][0]


def _ref_forward(params, lang, obj, co_mask, n_head):
    N, L, dim = lang.shape
    nobj = obj.shape[1]
    mask_q = jnp.transpose(co_mask, (0, 2, 1))
    node = _ref_mha(obj, lang, mask_q, params['msa_node'], n_head)
    diff = obj[:, :, None, :] - obj[:, None, :, :]
    xv = jnp.transpose(diff, (1, 0, 2, 3)).reshape(nobj * N, nobj, dim)
    xg = jnp.tile(lang, (nobj, 1, 1))
    me = jnp.tile(mask_q, (nobj, 1, 1))
    edge = _ref_mha(xv, xg, me, params['msa_edge'], n_head)
    edge = jnp.max(edge, axis=1).reshape(nobj, N, dim).transpose(1, 0, 2)

    def ln(x, gb):
        g, b = gb
        mu = jnp.mean(x, -1, keepdims=True)
        var = jnp.mean((x - mu) ** 2, -1, keepdims=True)
        return (x - mu) / jnp.sqrt(var + 1e-5) * g[0] + b[0]

    xe = ln(obj + edge, params['norme'])
    xn = ln(obj + node, params['normq'])
    x = jnp.concatenate([xn, xe], axis=-1)
    h = jax.nn.relu(x @ params['ffn_w1'] + params['ffn_b1'][0])
    y = xn + h @ params['ffn_w2'] + params['ffn_b2'][0]
    return ln(y, params['norm2'])


# ----------------------------------------------------------------------------
if __name__ == "__main__":
    N, L, nobj = 2, 8, 8
    dim, dim_ff, n_head = 32, 64, 4

    key = jax.random.PRNGKey(0)
    k_lang, k_obj, k_param = jax.random.split(key, 3)
    lang = jax.random.normal(k_lang, (N, L, dim), jnp.float32)
    obj = jax.random.normal(k_obj, (N, nobj, dim), jnp.float32)
    lang_mask = jnp.ones((N, L), jnp.float32).at[1, 6:].set(0.0)   # unused by module
    obj_mask = jnp.ones((N, nobj), jnp.float32)                    # unused by module
    co_mask = jnp.ones((N, L, nobj), jnp.float32).at[1, 6:, :].set(0.0)

    params = init_params(k_param, dim, dim_ff)

    # edge_chunk=4 -> 2 chunks, exercising the in-kernel pl.loop path.
    out = obj_edge_ga_forward(params, lang, obj, lang_mask, obj_mask, co_mask,
                              n_head=n_head, edge_chunk=4)
    out = jax.block_until_ready(out)
    assert out.shape == (N, nobj, dim)

    with jax.default_matmul_precision('highest'):
        ref = _ref_forward(params, lang, obj, co_mask, n_head)
    ref = jax.block_until_ready(ref)
    max_err = float(jnp.max(jnp.abs(out - ref)))
    assert max_err < 1e-2, f"mismatch vs reference: {max_err}"

    print("KERNEL_OK")
</pallas_src>

<mosaic_0001>
module attributes {stable_mosaic.version = 11 : i64} {
  func.func @_fused_kernel(%arg0: i32, %arg1: memref<1x8x32xf32, #tpu.memory_space<vmem>>, %arg2: memref<1x8x32xf32, #tpu.memory_space<vmem>>, %arg3: memref<1x8x8xf32, #tpu.memory_space<vmem>>, %arg4: memref<4x32x8xf32, #tpu.memory_space<vmem>>, %arg5: memref<4x32x8xf32, #tpu.memory_space<vmem>>, %arg6: memref<4x32x8xf32, #tpu.memory_space<vmem>>, %arg7: memref<4x1x8xf32, #tpu.memory_space<vmem>>, %arg8: memref<4x1x8xf32, #tpu.memory_space<vmem>>, %arg9: memref<4x1x8xf32, #tpu.memory_space<vmem>>, %arg10: memref<32x32xf32, #tpu.memory_space<vmem>>, %arg11: memref<1x32xf32, #tpu.memory_space<vmem>>, %arg12: memref<4x32x8xf32, #tpu.memory_space<vmem>>, %arg13: memref<4x32x8xf32, #tpu.memory_space<vmem>>, %arg14: memref<4x32x8xf32, #tpu.memory_space<vmem>>, %arg15: memref<4x1x8xf32, #tpu.memory_space<vmem>>, %arg16: memref<4x1x8xf32, #tpu.memory_space<vmem>>, %arg17: memref<4x1x8xf32, #tpu.memory_space<vmem>>, %arg18: memref<32x32xf32, #tpu.memory_space<vmem>>, %arg19: memref<1x32xf32, #tpu.memory_space<vmem>>, %arg20: memref<1x32xf32, #tpu.memory_space<vmem>>, %arg21: memref<1x32xf32, #tpu.memory_space<vmem>>, %arg22: memref<1x32xf32, #tpu.memory_space<vmem>>, %arg23: memref<1x32xf32, #tpu.memory_space<vmem>>, %arg24: memref<1x32xf32, #tpu.memory_space<vmem>>, %arg25: memref<1x32xf32, #tpu.memory_space<vmem>>, %arg26: memref<32x64xf32, #tpu.memory_space<vmem>>, %arg27: memref<32x64xf32, #tpu.memory_space<vmem>>, %arg28: memref<1x64xf32, #tpu.memory_space<vmem>>, %arg29: memref<64x32xf32, #tpu.memory_space<vmem>>, %arg30: memref<1x32xf32, #tpu.memory_space<vmem>>, %arg31: memref<1x8x32xf32, #tpu.memory_space<vmem>>, %arg32: memref<8x32xf32, #tpu.memory_space<vmem>>, %arg33: memref<4x8x8xf32, #tpu.memory_space<vmem>>) attributes {dimension_semantics = [#tpu.dimension_semantics<parallel>], iteration_bounds = array<i64: 2>, scalar_prefetch = 0 : i64, scratch_operands = 2 : i64, tpu.core_type = #tpu.core_type<tc>, window_params = [{transform_indices = @transform_0, window_bounds = array<i64: 1, 8, 32>}, {transform_indices = @transform_1, window_bounds = array<i64: 1, 8, 32>}, {transform_indices = @transform_2, window_bounds = array<i64: 1, 8, 8>}, {pipeline_mode = #tpu.pipeline_mode<synchronous>, transform_indices = @transform_3, window_bounds = array<i64: 4, 32, 8>}, {pipeline_mode = #tpu.pipeline_mode<synchronous>, transform_indices = @transform_4, window_bounds = array<i64: 4, 32, 8>}, {pipeline_mode = #tpu.pipeline_mode<synchronous>, transform_indices = @transform_5, window_bounds = array<i64: 4, 32, 8>}, {pipeline_mode = #tpu.pipeline_mode<synchronous>, transform_indices = @transform_6, window_bounds = array<i64: 4, 1, 8>}, {pipeline_mode = #tpu.pipeline_mode<synchronous>, transform_indices = @transform_7, window_bounds = array<i64: 4, 1, 8>}, {pipeline_mode = #tpu.pipeline_mode<synchronous>, transform_indices = @transform_8, window_bounds = array<i64: 4, 1, 8>}, {pipeline_mode = #tpu.pipeline_mode<synchronous>, transform_indices = @transform_9, window_bounds = array<i64: 32, 32>}, {pipeline_mode = #tpu.pipeline_mode<synchronous>, transform_indices = @transform_10, window_bounds = array<i64: 1, 32>}, {pipeline_mode = #tpu.pipeline_mode<synchronous>, transform_indices = @transform_11, window_bounds = array<i64: 4, 32, 8>}, {pipeline_mode = #tpu.pipeline_mode<synchronous>, transform_indices = @transform_12, window_bounds = array<i64: 4, 32, 8>}, {pipeline_mode = #tpu.pipeline_mode<synchronous>, transform_indices = @transform_13, window_bounds = array<i64: 4, 32, 8>}, {pipeline_mode = #tpu.pipeline_mode<synchronous>, transform_indices = @transform_14, window_bounds = array<i64: 4, 1, 8>}, {pipeline_mode = #tpu.pipeline_mode<synchronous>, transform_indices = @transform_15, window_bounds = array<i64: 4, 1, 8>}, {pipeline_mode = #tpu.pipeline_mode<synchronous>, transform_indices = @transform_16, window_bounds = array<i64: 4, 1, 8>}, {pipeline_mode = #tpu.pipeline_mode<synchronous>, transform_indices = @transform_17, window_bounds = array<i64: 32, 32>}, {pipeline_mode = #tpu.pipeline_mode<synchronous>, transform_indices = @transform_18, window_bounds = array<i64: 1, 32>}, {pipeline_mode = #tpu.pipeline_mode<synchronous>, transform_indices = @transform_19, window_bounds = array<i64: 1, 32>}, {pipeline_mode = #tpu.pipeline_mode<synchronous>, transform_indices = @transform_20, window_bounds = array<i64: 1, 32>}, {pipeline_mode = #tpu.pipeline_mode<synchronous>, transform_indices = @transform_21, window_bounds = array<i64: 1, 32>}, {pipeline_mode = #tpu.pipeline_mode<synchronous>, transform_indices = @transform_22, window_bounds = array<i64: 1, 32>}, {pipeline_mode = #tpu.pipeline_mode<synchronous>, transform_indices = @transform_23, window_bounds = array<i64: 1, 32>}, {pipeline_mode = #tpu.pipeline_mode<synchronous>, transform_indices = @transform_24, window_bounds = array<i64: 1, 32>}, {pipeline_mode = #tpu.pipeline_mode<synchronous>, transform_indices = @transform_25, window_bounds = array<i64: 32, 64>}, {pipeline_mode = #tpu.pipeline_mode<synchronous>, transform_indices = @transform_26, window_bounds = array<i64: 32, 64>}, {pipeline_mode = #tpu.pipeline_mode<synchronous>, transform_indices = @transform_27, window_bounds = array<i64: 1, 64>}, {pipeline_mode = #tpu.pipeline_mode<synchronous>, transform_indices = @transform_28, window_bounds = array<i64: 64, 32>}, {pipeline_mode = #tpu.pipeline_mode<synchronous>, transform_indices = @transform_29, window_bounds = array<i64: 1, 32>}, {transform_indices = @transform_30, window_bounds = array<i64: 1, 8, 32>}]} {
    %c0 = arith.constant 0 : index
    %c0_0 = arith.constant 0 : index
    %c0_1 = arith.constant 0 : index
    %0 = vector.load %arg1[%c0, %c0_0, %c0_1] : memref<1x8x32xf32, #tpu.memory_space<vmem>>, vector<1x8x32xf32>
    %1 = vector.shape_cast %0 : vector<1x8x32xf32> to vector<8x32xf32>
    %c0_2 = arith.constant 0 : index
    %c0_3 = arith.constant 0 : index
    %c0_4 = arith.constant 0 : index
    %2 = vector.load %arg2[%c0_2, %c0_3, %c0_4] : memref<1x8x32xf32, #tpu.memory_space<vmem>>, vector<1x8x32xf32>
    %3 = vector.shape_cast %2 : vector<1x8x32xf32> to vector<8x32xf32>
    %c0_5 = arith.constant 0 : index
    %c0_6 = arith.constant 0 : index
    %c0_7 = arith.constant 0 : index
    %4 = vector.load %arg3[%c0_5, %c0_6, %c0_7] : memref<1x8x8xf32, #tpu.memory_space<vmem>>, vector<1x8x8xf32>
    %5 = vector.shape_cast %4 : vector<1x8x8xf32> to vector<8x8xf32>
    %c0_8 = arith.constant 0 : index
    %c0_9 = arith.constant 0 : index
    %c0_10 = arith.constant 0 : index
    %6 = vector.load %arg4[%c0_8, %c0_9, %c0_10] : memref<4x32x8xf32, #tpu.memory_space<vmem>>, vector<4x32x8xf32>
    %c0_11 = arith.constant 0 : index
    %c0_12 = arith.constant 0 : index
    %c0_13 = arith.constant 0 : index
    %7 = vector.load %arg7[%c0_11, %c0_12, %c0_13] : memref<4x1x8xf32, #tpu.memory_space<vmem>>, vector<4x1x8xf32>
    %8 = vector.extract_strided_slice %6 {offsets = [0, 0, 0], sizes = [1, 32, 8], strides = [1, 1, 1]} : vector<4x32x8xf32> to vector<1x32x8xf32>
    %9 = vector.shape_cast %8 : vector<1x32x8xf32> to vector<32x8xf32>
    %cst = arith.constant dense<0.000000e+00> : vector<8x8xf32>
    %10 = tpu.matmul %3, %9, %cst {dimension_numbers = #tpu.dot_dimension_numbers<[1], [0], [0], [1], [0, 0, 1, 1], [], []>} : vector<8x32xf32>, vector<32x8xf32>, vector<8x8xf32> -> vector<8x8xf32>
    %11 = vector.extract_strided_slice %6 {offsets = [1, 0, 0], sizes = [1, 32, 8], strides = [1, 1, 1]} : vector<4x32x8xf32> to vector<1x32x8xf32>
    %12 = vector.shape_cast %11 : vector<1x32x8xf32> to vector<32x8xf32>
    %cst_14 = arith.constant dense<0.000000e+00> : vector<8x8xf32>
    %13 = tpu.matmul %3, %12, %cst_14 {dimension_numbers = #tpu.dot_dimension_numbers<[1], [0], [0], [1], [0, 0, 1, 1], [], []>} : vector<8x32xf32>, vector<32x8xf32>, vector<8x8xf32> -> vector<8x8xf32>
    %14 = vector.extract_strided_slice %6 {offsets = [2, 0, 0], sizes = [1, 32, 8], strides = [1, 1, 1]} : vector<4x32x8xf32> to vector<1x32x8xf32>
    %15 = vector.shape_cast %14 : vector<1x32x8xf32> to vector<32x8xf32>
    %cst_15 = arith.constant dense<0.000000e+00> : vector<8x8xf32>
    %16 = tpu.matmul %3, %15, %cst_15 {dimension_numbers = #tpu.dot_dimension_numbers<[1], [0], [0], [1], [0, 0, 1, 1], [], []>} : vector<8x32xf32>, vector<32x8xf32>, vector<8x8xf32> -> vector<8x8xf32>
    %17 = vector.extract_strided_slice %6 {offsets = [3, 0, 0], sizes = [1, 32, 8], strides = [1, 1, 1]} : vector<4x32x8xf32> to vector<1x32x8xf32>
    %18 = vector.shape_cast %17 : vector<1x32x8xf32> to vector<32x8xf32>
    %cst_16 = arith.constant dense<0.000000e+00> : vector<8x8xf32>
    %19 = tpu.matmul %3, %18, %cst_16 {dimension_numbers = #tpu.dot_dimension_numbers<[1], [0], [0], [1], [0, 0, 1, 1], [], []>} : vector<8x32xf32>, vector<32x8xf32>, vector<8x8xf32> -> vector<8x8xf32>
    %20 = vector.shape_cast %10 : vector<8x8xf32> to vector<1x8x8xf32>
    %21 = vector.shape_cast %13 : vector<8x8xf32> to vector<1x8x8xf32>
    %22 = vector.shape_cast %16 : vector<8x8xf32> to vector<1x8x8xf32>
    %23 = vector.shape_cast %19 : vector<8x8xf32> to vector<1x8x8xf32>
    %24 = tpu.concatenate %20, %21, %22, %23 in 0 : vector<1x8x8xf32>, vector<1x8x8xf32>, vector<1x8x8xf32>, vector<1x8x8xf32> -> vector<4x8x8xf32>
    %25 = vector.broadcast %7 : vector<4x1x8xf32> to vector<4x8x8xf32>
    %26 = arith.addf %24, %25 : vector<4x8x8xf32>
    %c0_17 = arith.constant 0 : index
    %c0_18 = arith.constant 0 : index
    %c0_19 = arith.constant 0 : index
    %27 = vector.load %arg5[%c0_17, %c0_18, %c0_19] : memref<4x32x8xf32, #tpu.memory_space<vmem>>, vector<4x32x8xf32>
    %c0_20 = arith.constant 0 : index
    %c0_21 = arith.constant 0 : index
    %c0_22 = arith.constant 0 : index
    %28 = vector.load %arg8[%c0_20, %c0_21, %c0_22] : memref<4x1x8xf32, #tpu.memory_space<vmem>>, vector<4x1x8xf32>
    %29 = vector.extract_strided_slice %27 {offsets = [0, 0, 0], sizes = [1, 32, 8], strides = [1, 1, 1]} : vector<4x32x8xf32> to vector<1x32x8xf32>
    %30 = vector.shape_cast %29 : vector<1x32x8xf32> to vector<32x8xf32>
    %cst_23 = arith.constant dense<0.000000e+00> : vector<8x8xf32>
    %31 = tpu.matmul %1, %30, %cst_23 {dimension_numbers = #tpu.dot_dimension_numbers<[1], [0], [0], [1], [0, 0, 1, 1], [], []>} : vector<8x32xf32>, vector<32x8xf32>, vector<8x8xf32> -> vector<8x8xf32>
    %32 = vector.extract_strided_slice %27 {offsets = [1, 0, 0], sizes = [1, 32, 8], strides = [1, 1, 1]} : vector<4x32x8xf32> to vector<1x32x8xf32>
    %33 = vector.shape_cast %32 : vector<1x32x8xf32> to vector<32x8xf32>
    %cst_24 = arith.constant dense<0.000000e+00> : vector<8x8xf32>
    %34 = tpu.matmul %1, %33, %cst_24 {dimension_numbers = #tpu.dot_dimension_numbers<[1], [0], [0], [1], [0, 0, 1, 1], [], []>} : vector<8x32xf32>, vector<32x8xf32>, vector<8x8xf32> -> vector<8x8xf32>
    %35 = vector.extract_strided_slice %27 {offsets = [2, 0, 0], sizes = [1, 32, 8], strides = [1, 1, 1]} : vector<4x32x8xf32> to vector<1x32x8xf32>
    %36 = vector.shape_cast %35 : vector<1x32x8xf32> to vector<32x8xf32>
    %cst_25 = arith.constant dense<0.000000e+00> : vector<8x8xf32>
    %37 = tpu.matmul %1, %36, %cst_25 {dimension_numbers = #tpu.dot_dimension_numbers<[1], [0], [0], [1], [0, 0, 1, 1], [], []>} : vector<8x32xf32>, vector<32x8xf32>, vector<8x8xf32> -> vector<8x8xf32>
    %38 = vector.extract_strided_slice %27 {offsets = [3, 0, 0], sizes = [1, 32, 8], strides = [1, 1, 1]} : vector<4x32x8xf32> to vector<1x32x8xf32>
    %39 = vector.shape_cast %38 : vector<1x32x8xf32> to vector<32x8xf32>
    %cst_26 = arith.constant dense<0.000000e+00> : vector<8x8xf32>
    %40 = tpu.matmul %1, %39, %cst_26 {dimension_numbers = #tpu.dot_dimension_numbers<[1], [0], [0], [1], [0, 0, 1, 1], [], []>} : vector<8x32xf32>, vector<32x8xf32>, vector<8x8xf32> -> vector<8x8xf32>
    %41 = vector.shape_cast %31 : vector<8x8xf32> to vector<1x8x8xf32>
    %42 = vector.shape_cast %34 : vector<8x8xf32> to vector<1x8x8xf32>
    %43 = vector.shape_cast %37 : vector<8x8xf32> to vector<1x8x8xf32>
    %44 = vector.shape_cast %40 : vector<8x8xf32> to vector<1x8x8xf32>
    %45 = tpu.concatenate %41, %42, %43, %44 in 0 : vector<1x8x8xf32>, vector<1x8x8xf32>, vector<1x8x8xf32>, vector<1x8x8xf32> -> vector<4x8x8xf32>
    %46 = vector.broadcast %28 : vector<4x1x8xf32> to vector<4x8x8xf32>
    %47 = arith.addf %45, %46 : vector<4x8x8xf32>
    %c0_27 = arith.constant 0 : index
    %c0_28 = arith.constant 0 : index
    %c0_29 = arith.constant 0 : index
    %48 = vector.load %arg6[%c0_27, %c0_28, %c0_29] : memref<4x32x8xf32, #tpu.memory_space<vmem>>, vector<4x32x8xf32>
    %c0_30 = arith.constant 0 : index
    %c0_31 = arith.constant 0 : index
    %c0_32 = arith.constant 0 : index
    %49 = vector.load %arg9[%c0_30, %c0_31, %c0_32] : memref<4x1x8xf32, #tpu.memory_space<vmem>>, vector<4x1x8xf32>
    %50 = vector.extract_strided_slice %48 {offsets = [0, 0, 0], sizes = [1, 32, 8], strides = [1, 1, 1]} : vector<4x32x8xf32> to vector<1x32x8xf32>
    %51 = vector.shape_cast %50 : vector<1x32x8xf32> to vector<32x8xf32>
    %cst_33 = arith.constant dense<0.000000e+00> : vector<8x8xf32>
    %52 = tpu.matmul %1, %51, %cst_33 {dimension_numbers = #tpu.dot_dimension_numbers<[1], [0], [0], [1], [0, 0, 1, 1], [], []>} : vector<8x32xf32>, vector<32x8xf32>, vector<8x8xf32> -> vector<8x8xf32>
    %53 = vector.extract_strided_slice %48 {offsets = [1, 0, 0], sizes = [1, 32, 8], strides = [1, 1, 1]} : vector<4x32x8xf32> to vector<1x32x8xf32>
    %54 = vector.shape_cast %53 : vector<1x32x8xf32> to vector<32x8xf32>
    %cst_34 = arith.constant dense<0.000000e+00> : vector<8x8xf32>
    %55 = tpu.matmul %1, %54, %cst_34 {dimension_numbers = #tpu.dot_dimension_numbers<[1], [0], [0], [1], [0, 0, 1, 1], [], []>} : vector<8x32xf32>, vector<32x8xf32>, vector<8x8xf32> -> vector<8x8xf32>
    %56 = vector.extract_strided_slice %48 {offsets = [2, 0, 0], sizes = [1, 32, 8], strides = [1, 1, 1]} : vector<4x32x8xf32> to vector<1x32x8xf32>
    %57 = vector.shape_cast %56 : vector<1x32x8xf32> to vector<32x8xf32>
    %cst_35 = arith.constant dense<0.000000e+00> : vector<8x8xf32>
    %58 = tpu.matmul %1, %57, %cst_35 {dimension_numbers = #tpu.dot_dimension_numbers<[1], [0], [0], [1], [0, 0, 1, 1], [], []>} : vector<8x32xf32>, vector<32x8xf32>, vector<8x8xf32> -> vector<8x8xf32>
    %59 = vector.extract_strided_slice %48 {offsets = [3, 0, 0], sizes = [1, 32, 8], strides = [1, 1, 1]} : vector<4x32x8xf32> to vector<1x32x8xf32>
    %60 = vector.shape_cast %59 : vector<1x32x8xf32> to vector<32x8xf32>
    %cst_36 = arith.constant dense<0.000000e+00> : vector<8x8xf32>
    %61 = tpu.matmul %1, %60, %cst_36 {dimension_numbers = #tpu.dot_dimension_numbers<[1], [0], [0], [1], [0, 0, 1, 1], [], []>} : vector<8x32xf32>, vector<32x8xf32>, vector<8x8xf32> -> vector<8x8xf32>
    %62 = vector.shape_cast %52 : vector<8x8xf32> to vector<1x8x8xf32>
    %63 = vector.shape_cast %55 : vector<8x8xf32> to vector<1x8x8xf32>
    %64 = vector.shape_cast %58 : vector<8x8xf32> to vector<1x8x8xf32>
    %65 = vector.shape_cast %61 : vector<8x8xf32> to vector<1x8x8xf32>
    %66 = tpu.concatenate %62, %63, %64, %65 in 0 : vector<1x8x8xf32>, vector<1x8x8xf32>, vector<1x8x8xf32>, vector<1x8x8xf32> -> vector<4x8x8xf32>
    %67 = vector.broadcast %49 : vector<4x1x8xf32> to vector<4x8x8xf32>
    %68 = arith.addf %66, %67 : vector<4x8x8xf32>
    "tpu.trace_start"() <{level = 10 : i32, message = "hne,hle->hnl"}> : () -> ()
    %cst_37 = arith.constant dense<0.000000e+00> : vector<4x8x8xf32>
    %69 = tpu.matmul %26, %47, %cst_37 {dimension_numbers = #tpu.dot_dimension_numbers<[2], [2], [1], [1], [0, 0, 0, 1, 1, 1], [0], [0]>} : vector<4x8x8xf32>, vector<4x8x8xf32>, vector<4x8x8xf32> -> vector<4x8x8xf32>
    "tpu.trace_stop"() : () -> ()
    %70 = vector.shape_cast %5 : vector<8x8xf32> to vector<1x8x8xf32>
    %71 = vector.broadcast %70 : vector<1x8x8xf32> to vector<4x8x8xf32>
    %72 = arith.addf %69, %71 : vector<4x8x8xf32>
    %cst_38 = arith.constant dense<0xFF800000> : vector<4x8xf32>
    %73 = vector.multi_reduction <maximumf>, %72, %cst_38 [2] : vector<4x8x8xf32> to vector<4x8xf32>
    %74 = vector.shape_cast %73 : vector<4x8xf32> to vector<4x8x1xf32>
    %75 = vector.broadcast %74 : vector<4x8x1xf32> to vector<4x8x8xf32>
    %76 = arith.subf %72, %75 : vector<4x8x8xf32>
    %77 = math.exp %76 : vector<4x8x8xf32>
    %cst_39 = arith.constant dense<0.000000e+00> : vector<4x8xf32>
    %78 = vector.multi_reduction <add>, %77, %cst_39 [2] : vector<4x8x8xf32> to vector<4x8xf32>
    %79 = vector.shape_cast %78 : vector<4x8xf32> to vector<4x8x1xf32>
    %80 = tpu.reciprocal %79 {approx = true} : vector<4x8x1xf32> -> vector<4x8x1xf32>
    %81 = vector.broadcast %80 : vector<4x8x1xf32> to vector<4x8x8xf32>
    %82 = arith.mulf %77, %81 : vector<4x8x8xf32>
    "tpu.trace_start"() <{level = 10 : i32, message = "hnl,hle->hne"}> : () -> ()
    %cst_40 = arith.constant dense<0.000000e+00> : vector<4x8x8xf32>
    %83 = tpu.matmul %82, %68, %cst_40 {dimension_numbers = #tpu.dot_dimension_numbers<[2], [1], [1], [2], [0, 0, 0, 1, 1, 2], [0], [0]>} : vector<4x8x8xf32>, vector<4x8x8xf32>, vector<4x8x8xf32> -> vector<4x8x8xf32>
    "tpu.trace_stop"() : () -> ()
    %84 = vector.extract_strided_slice %83 {offsets = [0, 0, 0], sizes = [1, 8, 8], strides = [1, 1, 1]} : vector<4x8x8xf32> to vector<1x8x8xf32>
    %85 = vector.shape_cast %84 : vector<1x8x8xf32> to vector<8x8xf32>
    %86 = vector.extract_strided_slice %83 {offsets = [1, 0, 0], sizes = [1, 8, 8], strides = [1, 1, 1]} : vector<4x8x8xf32> to vector<1x8x8xf32>
    %87 = vector.shape_cast %86 : vector<1x8x8xf32> to vector<8x8xf32>
    %88 = vector.extract_strided_slice %83 {offsets = [2, 0, 0], sizes = [1, 8, 8], strides = [1, 1, 1]} : vector<4x8x8xf32> to vector<1x8x8xf32>
    %89 = vector.shape_cast %88 : vector<1x8x8xf32> to vector<8x8xf32>
    %90 = vector.extract_strided_slice %83 {offsets = [3, 0, 0], sizes = [1, 8, 8], strides = [1, 1, 1]} : vector<4x8x8xf32> to vector<1x8x8xf32>
    %91 = vector.shape_cast %90 : vector<1x8x8xf32> to vector<8x8xf32>
    %92 = tpu.concatenate %85, %87, %89, %91 in 1 : vector<8x8xf32>, vector<8x8xf32>, vector<8x8xf32>, vector<8x8xf32> -> vector<8x32xf32>
    %c0_41 = arith.constant 0 : index
    %c0_42 = arith.constant 0 : index
    %93 = vector.load %arg10[%c0_41, %c0_42] : memref<32x32xf32, #tpu.memory_space<vmem>>, vector<32x32xf32>
    %cst_43 = arith.constant dense<0.000000e+00> : vector<8x32xf32>
    %94 = tpu.matmul %92, %93, %cst_43 {dimension_numbers = #tpu.dot_dimension_numbers<[1], [0], [0], [1], [0, 0, 1, 1], [], []>} : vector<8x32xf32>, vector<32x32xf32>, vector<8x32xf32> -> vector<8x32xf32>
    %c0_44 = arith.constant 0 : index
    %c0_45 = arith.constant 0 : index
    %95 = vector.load %arg11[%c0_44, %c0_45] : memref<1x32xf32, #tpu.memory_space<vmem>>, vector<1x32xf32>
    %96 = vector.broadcast %95 : vector<1x32xf32> to vector<8x32xf32>
    %97 = arith.addf %94, %96 : vector<8x32xf32>
    %c0_46 = arith.constant 0 : index
    %c0_47 = arith.constant 0 : index
    %c0_48 = arith.constant 0 : index
    %98 = vector.load %arg13[%c0_46, %c0_47, %c0_48] : memref<4x32x8xf32, #tpu.memory_space<vmem>>, vector<4x32x8xf32>
    %c0_49 = arith.constant 0 : index
    %c0_50 = arith.constant 0 : index
    %c0_51 = arith.constant 0 : index
    %99 = vector.load %arg16[%c0_49, %c0_50, %c0_51] : memref<4x1x8xf32, #tpu.memory_space<vmem>>, vector<4x1x8xf32>
    %100 = vector.extract_strided_slice %98 {offsets = [0, 0, 0], sizes = [1, 32, 8], strides = [1, 1, 1]} : vector<4x32x8xf32> to vector<1x32x8xf32>
    %101 = vector.shape_cast %100 : vector<1x32x8xf32> to vector<32x8xf32>
    %cst_52 = arith.constant dense<0.000000e+00> : vector<8x8xf32>
    %102 = tpu.matmul %1, %101, %cst_52 {dimension_numbers = #tpu.dot_dimension_numbers<[1], [0], [0], [1], [0, 0, 1, 1], [], []>} : vector<8x32xf32>, vector<32x8xf32>, vector<8x8xf32> -> vector<8x8xf32>
    %103 = vector.extract_strided_slice %98 {offsets = [1, 0, 0], sizes = [1, 32, 8], strides = [1, 1, 1]} : vector<4x32x8xf32> to vector<1x32x8xf32>
    %104 = vector.shape_cast %103 : vector<1x32x8xf32> to vector<32x8xf32>
    %cst_53 = arith.constant dense<0.000000e+00> : vector<8x8xf32>
    %105 = tpu.matmul %1, %104, %cst_53 {dimension_numbers = #tpu.dot_dimension_numbers<[1], [0], [0], [1], [0, 0, 1, 1], [], []>} : vector<8x32xf32>, vector<32x8xf32>, vector<8x8xf32> -> vector<8x8xf32>
    %106 = vector.extract_strided_slice %98 {offsets = [2, 0, 0], sizes = [1, 32, 8], strides = [1, 1, 1]} : vector<4x32x8xf32> to vector<1x32x8xf32>
    %107 = vector.shape_cast %106 : vector<1x32x8xf32> to vector<32x8xf32>
    %cst_54 = arith.constant dense<0.000000e+00> : vector<8x8xf32>
    %108 = tpu.matmul %1, %107, %cst_54 {dimension_numbers = #tpu.dot_dimension_numbers<[1], [0], [0], [1], [0, 0, 1, 1], [], []>} : vector<8x32xf32>, vector<32x8xf32>, vector<8x8xf32> -> vector<8x8xf32>
    %109 = vector.extract_strided_slice %98 {offsets = [3, 0, 0], sizes = [1, 32, 8], strides = [1, 1, 1]} : vector<4x32x8xf32> to vector<1x32x8xf32>
    %110 = vector.shape_cast %109 : vector<1x32x8xf32> to vector<32x8xf32>
    %cst_55 = arith.constant dense<0.000000e+00> : vector<8x8xf32>
    %111 = tpu.matmul %1, %110, %cst_55 {dimension_numbers = #tpu.dot_dimension_numbers<[1], [0], [0], [1], [0, 0, 1, 1], [], []>} : vector<8x32xf32>, vector<32x8xf32>, vector<8x8xf32> -> vector<8x8xf32>
    %112 = vector.shape_cast %102 : vector<8x8xf32> to vector<1x8x8xf32>
    %113 = vector.shape_cast %105 : vector<8x8xf32> to vector<1x8x8xf32>
    %114 = vector.shape_cast %108 : vector<8x8xf32> to vector<1x8x8xf32>
    %115 = vector.shape_cast %111 : vector<8x8xf32> to vector<1x8x8xf32>
    %116 = tpu.concatenate %112, %113, %114, %115 in 0 : vector<1x8x8xf32>, vector<1x8x8xf32>, vector<1x8x8xf32>, vector<1x8x8xf32> -> vector<4x8x8xf32>
    %117 = vector.broadcast %99 : vector<4x1x8xf32> to vector<4x8x8xf32>
    %118 = arith.addf %116, %117 : vector<4x8x8xf32>
    %c0_56 = arith.constant 0 : index
    %c0_57 = arith.constant 0 : index
    %c0_58 = arith.constant 0 : index
    %119 = vector.load %arg14[%c0_56, %c0_57, %c0_58] : memref<4x32x8xf32, #tpu.memory_space<vmem>>, vector<4x32x8xf32>
    %c0_59 = arith.constant 0 : index
    %c0_60 = arith.constant 0 : index
    %c0_61 = arith.constant 0 : index
    %120 = vector.load %arg17[%c0_59, %c0_60, %c0_61] : memref<4x1x8xf32, #tpu.memory_space<vmem>>, vector<4x1x8xf32>
    %121 = vector.extract_strided_slice %119 {offsets = [0, 0, 0], sizes = [1, 32, 8], strides = [1, 1, 1]} : vector<4x32x8xf32> to vector<1x32x8xf32>
    %122 = vector.shape_cast %121 : vector<1x32x8xf32> to vector<32x8xf32>
    %cst_62 = arith.constant dense<0.000000e+00> : vector<8x8xf32>
    %123 = tpu.matmul %1, %122, %cst_62 {dimension_numbers = #tpu.dot_dimension_numbers<[1], [0], [0], [1], [0, 0, 1, 1], [], []>} : vector<8x32xf32>, vector<32x8xf32>, vector<8x8xf32> -> vector<8x8xf32>
    %124 = vector.extract_strided_slice %119 {offsets = [1, 0, 0], sizes = [1, 32, 8], strides = [1, 1, 1]} : vector<4x32x8xf32> to vector<1x32x8xf32>
    %125 = vector.shape_cast %124 : vector<1x32x8xf32> to vector<32x8xf32>
    %cst_63 = arith.constant dense<0.000000e+00> : vector<8x8xf32>
    %126 = tpu.matmul %1, %125, %cst_63 {dimension_numbers = #tpu.dot_dimension_numbers<[1], [0], [0], [1], [0, 0, 1, 1], [], []>} : vector<8x32xf32>, vector<32x8xf32>, vector<8x8xf32> -> vector<8x8xf32>
    %127 = vector.extract_strided_slice %119 {offsets = [2, 0, 0], sizes = [1, 32, 8], strides = [1, 1, 1]} : vector<4x32x8xf32> to vector<1x32x8xf32>
    %128 = vector.shape_cast %127 : vector<1x32x8xf32> to vector<32x8xf32>
    %cst_64 = arith.constant dense<0.000000e+00> : vector<8x8xf32>
    %129 = tpu.matmul %1, %128, %cst_64 {dimension_numbers = #tpu.dot_dimension_numbers<[1], [0], [0], [1], [0, 0, 1, 1], [], []>} : vector<8x32xf32>, vector<32x8xf32>, vector<8x8xf32> -> vector<8x8xf32>
    %130 = vector.extract_strided_slice %119 {offsets = [3, 0, 0], sizes = [1, 32, 8], strides = [1, 1, 1]} : vector<4x32x8xf32> to vector<1x32x8xf32>
    %131 = vector.shape_cast %130 : vector<1x32x8xf32> to vector<32x8xf32>
    %cst_65 = arith.constant dense<0.000000e+00> : vector<8x8xf32>
    %132 = tpu.matmul %1, %131, %cst_65 {dimension_numbers = #tpu.dot_dimension_numbers<[1], [0], [0], [1], [0, 0, 1, 1], [], []>} : vector<8x32xf32>, vector<32x8xf32>, vector<8x8xf32> -> vector<8x8xf32>
    %133 = vector.shape_cast %123 : vector<8x8xf32> to vector<1x8x8xf32>
    %134 = vector.shape_cast %126 : vector<8x8xf32> to vector<1x8x8xf32>
    %135 = vector.shape_cast %129 : vector<8x8xf32> to vector<1x8x8xf32>
    %136 = vector.shape_cast %132 : vector<8x8xf32> to vector<1x8x8xf32>
    %137 = tpu.concatenate %133, %134, %135, %136 in 0 : vector<1x8x8xf32>, vector<1x8x8xf32>, vector<1x8x8xf32>, vector<1x8x8xf32> -> vector<4x8x8xf32>
    %138 = vector.broadcast %120 : vector<4x1x8xf32> to vector<4x8x8xf32>
    %139 = arith.addf %137, %138 : vector<4x8x8xf32>
    %c0_66 = arith.constant 0 : index
    %c0_67 = arith.constant 0 : index
    %c0_68 = arith.constant 0 : index
    %140 = vector.load %arg12[%c0_66, %c0_67, %c0_68] : memref<4x32x8xf32, #tpu.memory_space<vmem>>, vector<4x32x8xf32>
    %141 = vector.extract_strided_slice %140 {offsets = [0, 0, 0], sizes = [1, 32, 8], strides = [1, 1, 1]} : vector<4x32x8xf32> to vector<1x32x8xf32>
    %142 = vector.shape_cast %141 : vector<1x32x8xf32> to vector<32x8xf32>
    %cst_69 = arith.constant dense<0.000000e+00> : vector<8x8xf32>
    %143 = tpu.matmul %3, %142, %cst_69 {dimension_numbers = #tpu.dot_dimension_numbers<[1], [0], [0], [1], [0, 0, 1, 1], [], []>} : vector<8x32xf32>, vector<32x8xf32>, vector<8x8xf32> -> vector<8x8xf32>
    %144 = vector.extract_strided_slice %140 {offsets = [1, 0, 0], sizes = [1, 32, 8], strides = [1, 1, 1]} : vector<4x32x8xf32> to vector<1x32x8xf32>
    %145 = vector.shape_cast %144 : vector<1x32x8xf32> to vector<32x8xf32>
    %cst_70 = arith.constant dense<0.000000e+00> : vector<8x8xf32>
    %146 = tpu.matmul %3, %145, %cst_70 {dimension_numbers = #tpu.dot_dimension_numbers<[1], [0], [0], [1], [0, 0, 1, 1], [], []>} : vector<8x32xf32>, vector<32x8xf32>, vector<8x8xf32> -> vector<8x8xf32>
    %147 = vector.extract_strided_slice %140 {offsets = [2, 0, 0], sizes = [1, 32, 8], strides = [1, 1, 1]} : vector<4x32x8xf32> to vector<1x32x8xf32>
    %148 = vector.shape_cast %147 : vector<1x32x8xf32> to vector<32x8xf32>
    %cst_71 = arith.constant dense<0.000000e+00> : vector<8x8xf32>
    %149 = tpu.matmul %3, %148, %cst_71 {dimension_numbers = #tpu.dot_dimension_numbers<[1], [0], [0], [1], [0, 0, 1, 1], [], []>} : vector<8x32xf32>, vector<32x8xf32>, vector<8x8xf32> -> vector<8x8xf32>
    %150 = vector.extract_strided_slice %140 {offsets = [3, 0, 0], sizes = [1, 32, 8], strides = [1, 1, 1]} : vector<4x32x8xf32> to vector<1x32x8xf32>
    %151 = vector.shape_cast %150 : vector<1x32x8xf32> to vector<32x8xf32>
    %cst_72 = arith.constant dense<0.000000e+00> : vector<8x8xf32>
    %152 = tpu.matmul %3, %151, %cst_72 {dimension_numbers = #tpu.dot_dimension_numbers<[1], [0], [0], [1], [0, 0, 1, 1], [], []>} : vector<8x32xf32>, vector<32x8xf32>, vector<8x8xf32> -> vector<8x8xf32>
    %153 = vector.shape_cast %143 : vector<8x8xf32> to vector<1x8x8xf32>
    %154 = vector.shape_cast %146 : vector<8x8xf32> to vector<1x8x8xf32>
    %155 = vector.shape_cast %149 : vector<8x8xf32> to vector<1x8x8xf32>
    %156 = vector.shape_cast %152 : vector<8x8xf32> to vector<1x8x8xf32>
    %157 = tpu.concatenate %153, %154, %155, %156 in 0 : vector<1x8x8xf32>, vector<1x8x8xf32>, vector<1x8x8xf32>, vector<1x8x8xf32> -> vector<4x8x8xf32>
    %c0_73 = arith.constant 0 : index
    %c0_74 = arith.constant 0 : index
    %c0_75 = arith.constant 0 : index
    %158 = vector.load %arg15[%c0_73, %c0_74, %c0_75] : memref<4x1x8xf32, #tpu.memory_space<vmem>>, vector<4x1x8xf32>
    %159 = vector.broadcast %158 : vector<4x1x8xf32> to vector<4x8x8xf32>
    %160 = arith.addf %157, %159 : vector<4x8x8xf32>
    "tpu.trace_start"() <{level = 10 : i32, message = "hne,hle->hnl"}> : () -> ()
    %cst_76 = arith.constant dense<0.000000e+00> : vector<4x8x8xf32>
    %161 = tpu.matmul %160, %118, %cst_76 {dimension_numbers = #tpu.dot_dimension_numbers<[2], [2], [1], [1], [0, 0, 0, 1, 1, 1], [0], [0]>} : vector<4x8x8xf32>, vector<4x8x8xf32>, vector<4x8x8xf32> -> vector<4x8x8xf32>
    %cst_77 = arith.constant dense<0.000000e+00> : vector<4x8x8xf32>
    %162 = tpu.matmul %157, %118, %cst_77 {dimension_numbers = #tpu.dot_dimension_numbers<[2], [2], [1], [1], [0, 0, 0, 1, 1, 1], [0], [0]>} : vector<4x8x8xf32>, vector<4x8x8xf32>, vector<4x8x8xf32> -> vector<4x8x8xf32>
    "tpu.trace_stop"() : () -> ()
    %163 = vector.shape_cast %5 : vector<8x8xf32> to vector<1x8x8xf32>
    %164 = vector.broadcast %163 : vector<1x8x8xf32> to vector<4x8x8xf32>
    %165 = arith.subf %162, %164 : vector<4x8x8xf32>
    %c0_78 = arith.constant 0 : index
    %c0_79 = arith.constant 0 : index
    %c0_80 = arith.constant 0 : index
    %166 = vector.load %arg33[%c0_78, %c0_79, %c0_80] : memref<4x8x8xf32, #tpu.memory_space<vmem>>, vector<4x8x8xf32>
    tpu.vector_store %arg33[%c0_78, %c0_79, %c0_80], %161 {strides = array<i32>} : memref<4x8x8xf32, #tpu.memory_space<vmem>>, vector<4x8x8xf32>,
    %c0_81 = arith.constant 0 : index
    %c0_82 = arith.constant 0 : index
    %167 = vector.load %arg18[%c0_81, %c0_82] : memref<32x32xf32, #tpu.memory_space<vmem>>, vector<32x32xf32>
    %c0_83 = arith.constant 0 : index
    %c0_84 = arith.constant 0 : index
    %168 = vector.load %arg19[%c0_83, %c0_84] : memref<1x32xf32, #tpu.memory_space<vmem>>, vector<1x32xf32>
    %c0_i32 = arith.constant 0 : i32
    %c2_i32 = arith.constant 2 : i32
    %169 = arith.addi %c0_i32, %c2_i32 : i32
    %c1_i32 = arith.constant 1 : i32
    scf.for %arg34 = %c0_i32 to %169 step %c1_i32  : i32 {
      %c1_i32_132 = arith.constant 1 : i32
      %264 = arith.muli %arg34, %c1_i32_132 : i32
      %c0_i32_133 = arith.constant 0 : i32
      %265 = arith.addi %c0_i32_133, %264 : i32
      %c4_i32 = arith.constant 4 : i32
      %266 = arith.muli %265, %c4_i32 : i32
      %267 = tpu.assume_multiple %266, 4 : i32
      %c0_134 = arith.constant 0 : index
      %268 = arith.index_cast %267 : i32 to index
      %c0_135 = arith.constant 0 : index
      %269 = vector.load %arg33[%c0_134, %268, %c0_135] : memref<4x8x8xf32, #tpu.memory_space<vmem>>, vector<4x4x8xf32>
      %270 = vector.shape_cast %269 : vector<4x4x8xf32> to vector<4x4x1x8xf32>
      %271 = vector.shape_cast %165 : vector<4x8x8xf32> to vector<4x1x8x8xf32>
      %272 = vector.broadcast %270 : vector<4x4x1x8xf32> to vector<4x4x8x8xf32>
      %273 = vector.broadcast %271 : vector<4x1x8x8xf32> to vector<4x4x8x8xf32>
      %274 = arith.subf %272, %273 : vector<4x4x8x8xf32>
      %275 = vector.shape_cast %274 : vector<4x4x8x8xf32> to vector<4x32x8xf32>
      %cst_136 = arith.constant dense<0xFF800000> : vector<4x32xf32>
      %276 = vector.multi_reduction <maximumf>, %275, %cst_136 [2] : vector<4x32x8xf32> to vector<4x32xf32>
      %277 = vector.shape_cast %276 : vector<4x32xf32> to vector<4x32x1xf32>
      %278 = vector.broadcast %277 : vector<4x32x1xf32> to vector<4x32x8xf32>
      %279 = arith.subf %275, %278 : vector<4x32x8xf32>
      %280 = math.exp %279 : vector<4x32x8xf32>
      %cst_137 = arith.constant dense<0.000000e+00> : vector<4x32xf32>
      %281 = vector.multi_reduction <add>, %280, %cst_137 [2] : vector<4x32x8xf32> to vector<4x32xf32>
      %282 = vector.shape_cast %281 : vector<4x32xf32> to vector<4x32x1xf32>
      %283 = tpu.reciprocal %282 {approx = true} : vector<4x32x1xf32> -> vector<4x32x1xf32>
      %284 = vector.broadcast %283 : vector<4x32x1xf32> to vector<4x32x8xf32>
      %285 = arith.mulf %280, %284 : vector<4x32x8xf32>
      "tpu.trace_start"() <{level = 10 : i32, message = "hql,hle->hqe"}> : () -> ()
      %cst_138 = arith.constant dense<0.000000e+00> : vector<4x32x8xf32>
      %286 = tpu.matmul %285, %139, %cst_138 {dimension_numbers = #tpu.dot_dimension_numbers<[2], [1], [1], [2], [0, 0, 0, 1, 1, 2], [0], [0]>} : vector<4x32x8xf32>, vector<4x8x8xf32>, vector<4x32x8xf32> -> vector<4x32x8xf32>
      "tpu.trace_stop"() : () -> ()
      %287 = vector.extract_strided_slice %286 {offsets = [0, 0, 0], sizes = [1, 32, 8], strides = [1, 1, 1]} : vector<4x32x8xf32> to vector<1x32x8xf32>
      %288 = vector.shape_cast %287 : vector<1x32x8xf32> to vector<32x8xf32>
      %289 = vector.extract_strided_slice %286 {offsets = [1, 0, 0], sizes = [1, 32, 8], strides = [1, 1, 1]} : vector<4x32x8xf32> to vector<1x32x8xf32>
      %290 = vector.shape_cast %289 : vector<1x32x8xf32> to vector<32x8xf32>
      %291 = vector.extract_strided_slice %286 {offsets = [2, 0, 0], sizes = [1, 32, 8], strides = [1, 1, 1]} : vector<4x32x8xf32> to vector<1x32x8xf32>
      %292 = vector.shape_cast %291 : vector<1x32x8xf32> to vector<32x8xf32>
      %293 = vector.extract_strided_slice %286 {offsets = [3, 0, 0], sizes = [1, 32, 8], strides = [1, 1, 1]} : vector<4x32x8xf32> to vector<1x32x8xf32>
      %294 = vector.shape_cast %293 : vector<1x32x8xf32> to vector<32x8xf32>
      %295 = tpu.concatenate %288, %290, %292, %294 in 1 : vector<32x8xf32>, vector<32x8xf32>, vector<32x8xf32>, vector<32x8xf32> -> vector<32x32xf32>
      %cst_139 = arith.constant dense<0.000000e+00> : vector<32x32xf32>
      %296 = tpu.matmul %295, %167, %cst_139 {dimension_numbers = #tpu.dot_dimension_numbers<[1], [0], [0], [1], [0, 0, 1, 1], [], []>} : vector<32x32xf32>, vector<32x32xf32>, vector<32x32xf32> -> vector<32x32xf32>
      %297 = vector.broadcast %168 : vector<1x32xf32> to vector<32x32xf32>
      %298 = arith.addf %296, %297 : vector<32x32xf32>
      %299 = vector.shape_cast %298 : vector<32x32xf32> to vector<4x8x32xf32>
      %cst_140 = arith.constant dense<0xFF800000> : vector<4x32xf32>
      %300 = vector.multi_reduction <maximumf>, %299, %cst_140 [1] : vector<4x8x32xf32> to vector<4x32xf32>
      %301 = arith.index_cast %267 : i32 to index
      %c0_141 = arith.constant 0 : index
      %302 = vector.load %arg32[%301, %c0_141] : memref<8x32xf32, #tpu.memory_space<vmem>>, vector<4x32xf32>
      tpu.vector_store %arg32[%301, %c0_141], %300 {strides = array<i32>} : memref<8x32xf32, #tpu.memory_space<vmem>>, vector<4x32xf32>,
    }
    %c2_i32_85 = arith.constant 2 : i32
    %c0_86 = arith.constant 0 : index
    %c0_87 = arith.constant 0 : index
    %170 = vector.load %arg32[%c0_86, %c0_87] : memref<8x32xf32, #tpu.memory_space<vmem>>, vector<8x32xf32>
    %171 = arith.addf %3, %170 : vector<8x32xf32>
    %c0_88 = arith.constant 0 : index
    %c0_89 = arith.constant 0 : index
    %172 = vector.load %arg20[%c0_88, %c0_89] : memref<1x32xf32, #tpu.memory_space<vmem>>, vector<1x32xf32>
    %c0_90 = arith.constant 0 : index
    %c0_91 = arith.constant 0 : index
    %173 = vector.load %arg21[%c0_90, %c0_91] : memref<1x32xf32, #tpu.memory_space<vmem>>, vector<1x32xf32>
    %cst_92 = arith.constant dense<0.000000e+00> : vector<8xf32>
    %174 = vector.multi_reduction <add>, %171, %cst_92 [1] : vector<8x32xf32> to vector<8xf32>
    %175 = vector.shape_cast %174 : vector<8xf32> to vector<8x1xf32>
    %cst_93 = arith.constant 3.200000e+01 : f32
    %176 = vector.broadcast %cst_93 : f32 to vector<8x1xf32>
    %177 = arith.divf %175, %176 : vector<8x1xf32>
    %178 = vector.broadcast %177 : vector<8x1xf32> to vector<8x32xf32>
    %179 = arith.subf %171, %178 : vector<8x32xf32>
    %180 = arith.mulf %179, %179 : vector<8x32xf32>
    %cst_94 = arith.constant dense<0.000000e+00> : vector<8xf32>
    %181 = vector.multi_reduction <add>, %180, %cst_94 [1] : vector<8x32xf32> to vector<8xf32>
    %182 = vector.shape_cast %181 : vector<8xf32> to vector<8x1xf32>
    %cst_95 = arith.constant 3.200000e+01 : f32
    %183 = vector.broadcast %cst_95 : f32 to vector<8x1xf32>
    %184 = arith.divf %182, %183 : vector<8x1xf32>
    %185 = vector.broadcast %177 : vector<8x1xf32> to vector<8x32xf32>
    %186 = arith.subf %171, %185 : vector<8x32xf32>
    %cst_96 = arith.constant 9.99999974E-6 : f32
    %187 = vector.broadcast %cst_96 : f32 to vector<8x1xf32>
    %188 = arith.addf %184, %187 : vector<8x1xf32>
    %189 = math.rsqrt %188 : vector<8x1xf32>
    %190 = vector.broadcast %189 : vector<8x1xf32> to vector<8x32xf32>
    %191 = arith.mulf %186, %190 : vector<8x32xf32>
    %192 = vector.broadcast %172 : vector<1x32xf32> to vector<8x32xf32>
    %193 = arith.mulf %191, %192 : vector<8x32xf32>
    %194 = vector.broadcast %173 : vector<1x32xf32> to vector<8x32xf32>
    %195 = arith.addf %193, %194 : vector<8x32xf32>
    %196 = arith.addf %3, %97 : vector<8x32xf32>
    %c0_97 = arith.constant 0 : index
    %c0_98 = arith.constant 0 : index
    %197 = vector.load %arg22[%c0_97, %c0_98] : memref<1x32xf32, #tpu.memory_space<vmem>>, vector<1x32xf32>
    %c0_99 = arith.constant 0 : index
    %c0_100 = arith.constant 0 : index
    %198 = vector.load %arg23[%c0_99, %c0_100] : memref<1x32xf32, #tpu.memory_space<vmem>>, vector<1x32xf32>
    %cst_101 = arith.constant dense<0.000000e+00> : vector<8xf32>
    %199 = vector.multi_reduction <add>, %196, %cst_101 [1] : vector<8x32xf32> to vector<8xf32>
    %200 = vector.shape_cast %199 : vector<8xf32> to vector<8x1xf32>
    %cst_102 = arith.constant 3.200000e+01 : f32
    %201 = vector.broadcast %cst_102 : f32 to vector<8x1xf32>
    %202 = arith.divf %200, %201 : vector<8x1xf32>
    %203 = vector.broadcast %202 : vector<8x1xf32> to vector<8x32xf32>
    %204 = arith.subf %196, %203 : vector<8x32xf32>
    %205 = arith.mulf %204, %204 : vector<8x32xf32>
    %cst_103 = arith.constant dense<0.000000e+00> : vector<8xf32>
    %206 = vector.multi_reduction <add>, %205, %cst_103 [1] : vector<8x32xf32> to vector<8xf32>
    %207 = vector.shape_cast %206 : vector<8xf32> to vector<8x1xf32>
    %cst_104 = arith.constant 3.200000e+01 : f32
    %208 = vector.broadcast %cst_104 : f32 to vector<8x1xf32>
    %209 = arith.divf %207, %208 : vector<8x1xf32>
    %210 = vector.broadcast %202 : vector<8x1xf32> to vector<8x32xf32>
    %211 = arith.subf %196, %210 : vector<8x32xf32>
    %cst_105 = arith.constant 9.99999974E-6 : f32
    %212 = vector.broadcast %cst_105 : f32 to vector<8x1xf32>
    %213 = arith.addf %209, %212 : vector<8x1xf32>
    %214 = math.rsqrt %213 : vector<8x1xf32>
    %215 = vector.broadcast %214 : vector<8x1xf32> to vector<8x32xf32>
    %216 = arith.mulf %211, %215 : vector<8x32xf32>
    %217 = vector.broadcast %197 : vector<1x32xf32> to vector<8x32xf32>
    %218 = arith.mulf %216, %217 : vector<8x32xf32>
    %219 = vector.broadcast %198 : vector<1x32xf32> to vector<8x32xf32>
    %220 = arith.addf %218, %219 : vector<8x32xf32>
    %c0_106 = arith.constant 0 : index
    %c0_107 = arith.constant 0 : index
    %221 = vector.load %arg26[%c0_106, %c0_107] : memref<32x64xf32, #tpu.memory_space<vmem>>, vector<32x64xf32>
    %cst_108 = arith.constant dense<0.000000e+00> : vector<8x64xf32>
    %222 = tpu.matmul %220, %221, %cst_108 {dimension_numbers = #tpu.dot_dimension_numbers<[1], [0], [0], [1], [0, 0, 1, 1], [], []>} : vector<8x32xf32>, vector<32x64xf32>, vector<8x64xf32> -> vector<8x64xf32>
    %c0_109 = arith.constant 0 : index
    %c0_110 = arith.constant 0 : index
    %223 = vector.load %arg27[%c0_109, %c0_110] : memref<32x64xf32, #tpu.memory_space<vmem>>, vector<32x64xf32>
    %cst_111 = arith.constant dense<0.000000e+00> : vector<8x64xf32>
    %224 = tpu.matmul %195, %223, %cst_111 {dimension_numbers = #tpu.dot_dimension_numbers<[1], [0], [0], [1], [0, 0, 1, 1], [], []>} : vector<8x32xf32>, vector<32x64xf32>, vector<8x64xf32> -> vector<8x64xf32>
    %225 = arith.addf %222, %224 : vector<8x64xf32>
    %c0_112 = arith.constant 0 : index
    %c0_113 = arith.constant 0 : index
    %226 = vector.load %arg28[%c0_112, %c0_113] : memref<1x64xf32, #tpu.memory_space<vmem>>, vector<1x64xf32>
    %227 = vector.broadcast %226 : vector<1x64xf32> to vector<8x64xf32>
    %228 = arith.addf %225, %227 : vector<8x64xf32>
    %cst_114 = arith.constant 0.000000e+00 : f32
    %229 = vector.broadcast %cst_114 : f32 to vector<8x64xf32>
    %230 = arith.maximumf %228, %229 : vector<8x64xf32>
    %c0_115 = arith.constant 0 : index
    %c0_116 = arith.constant 0 : index
    %231 = vector.load %arg29[%c0_115, %c0_116] : memref<64x32xf32, #tpu.memory_space<vmem>>, vector<64x32xf32>
    %cst_117 = arith.constant dense<0.000000e+00> : vector<8x32xf32>
    %232 = tpu.matmul %230, %231, %cst_117 {dimension_numbers = #tpu.dot_dimension_numbers<[1], [0], [0], [1], [0, 0, 1, 1], [], []>} : vector<8x64xf32>, vector<64x32xf32>, vector<8x32xf32> -> vector<8x32xf32>
    %233 = arith.addf %220, %232 : vector<8x32xf32>
    %c0_118 = arith.constant 0 : index
    %c0_119 = arith.constant 0 : index
    %234 = vector.load %arg30[%c0_118, %c0_119] : memref<1x32xf32, #tpu.memory_space<vmem>>, vector<1x32xf32>
    %235 = vector.broadcast %234 : vector<1x32xf32> to vector<8x32xf32>
    %236 = arith.addf %233, %235 : vector<8x32xf32>
    %c0_120 = arith.constant 0 : index
    %c0_121 = arith.constant 0 : index
    %237 = vector.load %arg24[%c0_120, %c0_121] : memref<1x32xf32, #tpu.memory_space<vmem>>, vector<1x32xf32>
    %c0_122 = arith.constant 0 : index
    %c0_123 = arith.constant 0 : index
    %238 = vector.load %arg25[%c0_122, %c0_123] : memref<1x32xf32, #tpu.memory_space<vmem>>, vector<1x32xf32>
    %cst_124 = arith.constant dense<0.000000e+00> : vector<8xf32>
    %239 = vector.multi_reduction <add>, %236, %cst_124 [1] : vector<8x32xf32> to vector<8xf32>
    %240 = vector.shape_cast %239 : vector<8xf32> to vector<8x1xf32>
    %cst_125 = arith.constant 3.200000e+01 : f32
    %241 = vector.broadcast %cst_125 : f32 to vector<8x1xf32>
    %242 = arith.divf %240, %241 : vector<8x1xf32>
    %243 = vector.broadcast %242 : vector<8x1xf32> to vector<8x32xf32>
    %244 = arith.subf %236, %243 : vector<8x32xf32>
    %245 = arith.mulf %244, %244 : vector<8x32xf32>
    %cst_126 = arith.constant dense<0.000000e+00> : vector<8xf32>
    %246 = vector.multi_reduction <add>, %245, %cst_126 [1] : vector<8x32xf32> to vector<8xf32>
    %247 = vector.shape_cast %246 : vector<8xf32> to vector<8x1xf32>
    %cst_127 = arith.constant 3.200000e+01 : f32
    %248 = vector.broadcast %cst_127 : f32 to vector<8x1xf32>
    %249 = arith.divf %247, %248 : vector<8x1xf32>
    %250 = vector.broadcast %242 : vector<8x1xf32> to vector<8x32xf32>
    %251 = arith.subf %236, %250 : vector<8x32xf32>
    %cst_128 = arith.constant 9.99999974E-6 : f32
    %252 = vector.broadcast %cst_128 : f32 to vector<8x1xf32>
    %253 = arith.addf %249, %252 : vector<8x1xf32>
    %254 = math.rsqrt %253 : vector<8x1xf32>
    %255 = vector.broadcast %254 : vector<8x1xf32> to vector<8x32xf32>
    %256 = arith.mulf %251, %255 : vector<8x32xf32>
    %257 = vector.broadcast %237 : vector<1x32xf32> to vector<8x32xf32>
    %258 = arith.mulf %256, %257 : vector<8x32xf32>
    %259 = vector.broadcast %238 : vector<1x32xf32> to vector<8x32xf32>
    %260 = arith.addf %258, %259 : vector<8x32xf32>
    %c0_129 = arith.constant 0 : index
    %c0_130 = arith.constant 0 : index
    %c0_131 = arith.constant 0 : index
    %261 = vector.load %arg31[%c0_129, %c0_130, %c0_131] : memref<1x8x32xf32, #tpu.memory_space<vmem>>, vector<1x8x32xf32>
    %262 = vector.shape_cast %261 : vector<1x8x32xf32> to vector<8x32xf32>
    %263 = vector.shape_cast %260 : vector<8x32xf32> to vector<1x8x32xf32>
    tpu.vector_store %arg31[%c0_129, %c0_130, %c0_131], %263 {strides = array<i32>} : memref<1x8x32xf32, #tpu.memory_space<vmem>>, vector<1x8x32xf32>,
    return
  }
  func.func @transform_0(%arg0: i32) -> (i32, i32, i32) {
    %c0_i32 = arith.constant 0 : i32
    %c0_i32_0 = arith.constant 0 : i32
    %c0_i32_1 = arith.constant 0 : i32
    return %arg0, %c0_i32, %c0_i32_0 : i32, i32, i32
  }
  func.func @transform_1(%arg0: i32) -> (i32, i32, i32) {
    %c0_i32 = arith.constant 0 : i32
    %c0_i32_0 = arith.constant 0 : i32
    %c0_i32_1 = arith.constant 0 : i32
    return %arg0, %c0_i32, %c0_i32_0 : i32, i32, i32
  }
  func.func @transform_2(%arg0: i32) -> (i32, i32, i32) {
    %c0_i32 = arith.constant 0 : i32
    %c0_i32_0 = arith.constant 0 : i32
    %c0_i32_1 = arith.constant 0 : i32
    return %arg0, %c0_i32, %c0_i32_0 : i32, i32, i32
  }
  func.func @transform_3(%arg0: i32) -> (i32, i32, i32) {
    %c0_i32 = arith.constant 0 : i32
    %c0_i32_0 = arith.constant 0 : i32
    %c0_i32_1 = arith.constant 0 : i32
    %c0_i32_2 = arith.constant 0 : i32
    return %c0_i32, %c0_i32_0, %c0_i32_1 : i32, i32, i32
  }
  func.func @transform_4(%arg0: i32) -> (i32, i32, i32) {
    %c0_i32 = arith.constant 0 : i32
    %c0_i32_0 = arith.constant 0 : i32
    %c0_i32_1 = arith.constant 0 : i32
    %c0_i32_2 = arith.constant 0 : i32
    return %c0_i32, %c0_i32_0, %c0_i32_1 : i32, i32, i32
  }
  func.func @transform_5(%arg0: i32) -> (i32, i32, i32) {
    %c0_i32 = arith.constant 0 : i32
    %c0_i32_0 = arith.constant 0 : i32
    %c0_i32_1 = arith.constant 0 : i32
    %c0_i32_2 = arith.constant 0 : i32
    return %c0_i32, %c0_i32_0, %c0_i32_1 : i32, i32, i32
  }
  func.func @transform_6(%arg0: i32) -> (i32, i32, i32) {
    %c0_i32 = arith.constant 0 : i32
    %c0_i32_0 = arith.constant 0 : i32
    %c0_i32_1 = arith.constant 0 : i32
    %c0_i32_2 = arith.constant 0 : i32
    return %c0_i32, %c0_i32_0, %c0_i32_1 : i32, i32, i32
  }
  func.func @transform_7(%arg0: i32) -> (i32, i32, i32) {
    %c0_i32 = arith.constant 0 : i32
    %c0_i32_0 = arith.constant 0 : i32
    %c0_i32_1 = arith.constant 0 : i32
    %c0_i32_2 = arith.constant 0 : i32
    return %c0_i32, %c0_i32_0, %c0_i32_1 : i32, i32, i32
  }
  func.func @transform_8(%arg0: i32) -> (i32, i32, i32) {
    %c0_i32 = arith.constant 0 : i32
    %c0_i32_0 = arith.constant 0 : i32
    %c0_i32_1 = arith.constant 0 : i32
    %c0_i32_2 = arith.constant 0 : i32
    return %c0_i32, %c0_i32_0, %c0_i32_1 : i32, i32, i32
  }
  func.func @transform_9(%arg0: i32) -> (i32, i32) {
    %c0_i32 = arith.constant 0 : i32
    %c0_i32_0 = arith.constant 0 : i32
    %c0_i32_1 = arith.constant 0 : i32
    return %c0_i32, %c0_i32_0 : i32, i32
  }
  func.func @transform_10(%arg0: i32) -> (i32, i32) {
    %c0_i32 = arith.constant 0 : i32
    %c0_i32_0 = arith.constant 0 : i32
    %c0_i32_1 = arith.constant 0 : i32
    return %c0_i32, %c0_i32_0 : i32, i32
  }
  func.func @transform_11(%arg0: i32) -> (i32, i32, i32) {
    %c0_i32 = arith.constant 0 : i32
    %c0_i32_0 = arith.constant 0 : i32
    %c0_i32_1 = arith.constant 0 : i32
    %c0_i32_2 = arith.constant 0 : i32
    return %c0_i32, %c0_i32_0, %c0_i32_1 : i32, i32, i32
  }
  func.func @transform_12(%arg0: i32) -> (i32, i32, i32) {
    %c0_i32 = arith.constant 0 : i32
    %c0_i32_0 = arith.constant 0 : i32
    %c0_i32_1 = arith.constant 0 : i32
    %c0_i32_2 = arith.constant 0 : i32
    return %c0_i32, %c0_i32_0, %c0_i32_1 : i32, i32, i32
  }
  func.func @transform_13(%arg0: i32) -> (i32, i32, i32) {
    %c0_i32 = arith.constant 0 : i32
    %c0_i32_0 = arith.constant 0 : i32
    %c0_i32_1 = arith.constant 0 : i32
    %c0_i32_2 = arith.constant 0 : i32
    return %c0_i32, %c0_i32_0, %c0_i32_1 : i32, i32, i32
  }
  func.func @transform_14(%arg0: i32) -> (i32, i32, i32) {
    %c0_i32 = arith.constant 0 : i32
    %c0_i32_0 = arith.constant 0 : i32
    %c0_i32_1 = arith.constant 0 : i32
    %c0_i32_2 = arith.constant 0 : i32
    return %c0_i32, %c0_i32_0, %c0_i32_1 : i32, i32, i32
  }
  func.func @transform_15(%arg0: i32) -> (i32, i32, i32) {
    %c0_i32 = arith.constant 0 : i32
    %c0_i32_0 = arith.constant 0 : i32
    %c0_i32_1 = arith.constant 0 : i32
    %c0_i32_2 = arith.constant 0 : i32
    return %c0_i32, %c0_i32_0, %c0_i32_1 : i32, i32, i32
  }
  func.func @transform_16(%arg0: i32) -> (i32, i32, i32) {
    %c0_i32 = arith.constant 0 : i32
    %c0_i32_0 = arith.constant 0 : i32
    %c0_i32_1 = arith.constant 0 : i32
    %c0_i32_2 = arith.constant 0 : i32
    return %c0_i32, %c0_i32_0, %c0_i32_1 : i32, i32, i32
  }
  func.func @transform_17(%arg0: i32) -> (i32, i32) {
    %c0_i32 = arith.constant 0 : i32
    %c0_i32_0 = arith.constant 0 : i32
    %c0_i32_1 = arith.constant 0 : i32
    return %c0_i32, %c0_i32_0 : i32, i32
  }
  func.func @transform_18(%arg0: i32) -> (i32, i32) {
    %c0_i32 = arith.constant 0 : i32
    %c0_i32_0 = arith.constant 0 : i32
    %c0_i32_1 = arith.constant 0 : i32
    return %c0_i32, %c0_i32_0 : i32, i32
  }
  func.func @transform_19(%arg0: i32) -> (i32, i32) {
    %c0_i32 = arith.constant 0 : i32
    %c0_i32_0 = arith.constant 0 : i32
    %c0_i32_1 = arith.constant 0 : i32
    return %c0_i32, %c0_i32_0 : i32, i32
  }
  func.func @transform_20(%arg0: i32) -> (i32, i32) {
    %c0_i32 = arith.constant 0 : i32
    %c0_i32_0 = arith.constant 0 : i32
    %c0_i32_1 = arith.constant 0 : i32
    return %c0_i32, %c0_i32_0 : i32, i32
  }
  func.func @transform_21(%arg0: i32) -> (i32, i32) {
    %c0_i32 = arith.constant 0 : i32
    %c0_i32_0 = arith.constant 0 : i32
    %c0_i32_1 = arith.constant 0 : i32
    return %c0_i32, %c0_i32_0 : i32, i32
  }
  func.func @transform_22(%arg0: i32) -> (i32, i32) {
    %c0_i32 = arith.constant 0 : i32
    %c0_i32_0 = arith.constant 0 : i32
    %c0_i32_1 = arith.constant 0 : i32
    return %c0_i32, %c0_i32_0 : i32, i32
  }
  func.func @transform_23(%arg0: i32) -> (i32, i32) {
    %c0_i32 = arith.constant 0 : i32
    %c0_i32_0 = arith.constant 0 : i32
    %c0_i32_1 = arith.constant 0 : i32
    return %c0_i32, %c0_i32_0 : i32, i32
  }
  func.func @transform_24(%arg0: i32) -> (i32, i32) {
    %c0_i32 = arith.constant 0 : i32
    %c0_i32_0 = arith.constant 0 : i32
    %c0_i32_1 = arith.constant 0 : i32
    return %c0_i32, %c0_i32_0 : i32, i32
  }
  func.func @transform_25(%arg0: i32) -> (i32, i32) {
    %c0_i32 = arith.constant 0 : i32
    %c0_i32_0 = arith.constant 0 : i32
    %c0_i32_1 = arith.constant 0 : i32
    return %c0_i32, %c0_i32_0 : i32, i32
  }
  func.func @transform_26(%arg0: i32) -> (i32, i32) {
    %c0_i32 = arith.constant 0 : i32
    %c0_i32_0 = arith.constant 0 : i32
    %c0_i32_1 = arith.constant 0 : i32
    return %c0_i32, %c0_i32_0 : i32, i32
  }
  func.func @transform_27(%arg0: i32) -> (i32, i32) {
    %c0_i32 = arith.constant 0 : i32
    %c0_i32_0 = arith.constant 0 : i32
    %c0_i32_1 = arith.constant 0 : i32
    return %c0_i32, %c0_i32_0 : i32, i32
  }
  func.func @transform_28(%arg0: i32) -> (i32, i32) {
    %c0_i32 = arith.constant 0 : i32
    %c0_i32_0 = arith.constant 0 : i32
    %c0_i32_1 = arith.constant 0 : i32
    return %c0_i32, %c0_i32_0 : i32, i32
  }
  func.func @transform_29(%arg0: i32) -> (i32, i32) {
    %c0_i32 = arith.constant 0 : i32
    %c0_i32_0 = arith.constant 0 : i32
    %c0_i32_1 = arith.constant 0 : i32
    return %c0_i32, %c0_i32_0 : i32, i32
  }
  func.func @transform_30(%arg0: i32) -> (i32, i32, i32) {
    %c0_i32 = arith.constant 0 : i32
    %c0_i32_0 = arith.constant 0 : i32
    %c0_i32_1 = arith.constant 0 : i32
    return %arg0, %c0_i32, %c0_i32_0 : i32, i32, i32
  }
}

</mosaic_0001>

<bundles_post_ra>
// kernel: tpu_custom_call.1
= control target key start
LH: loop header
LB: loop body
LE: loop exit
PB: predicated region body
PF: predicated region fallthrough
CT: control target
= control target key end

     0   :  { %s3438_s6 = smov 1   ;;  %s3439_s10 = smov 2   ;;  %s4287_s0 = inlined_call_operand.smem [shape: u32[31], index: -1, kind: input, shape index: {}] }
   0x1   :  { %s3483_s5 = sld [smem:[%s4287_s0]]   ;;  %s3440_s14 = smov 3  }
   0x2   :  { %s3488_s9 = sld [smem:[%s4287_s0 + %s3438_s6]]   ;;  %s3441_s18 = smov 4  }
   0x3   :  { %s3493_s13 = sld [smem:[%s4287_s0 + %s3439_s10]]   ;;  %s3442_s22 = smov 5  }
   0x4   :  { %s3498_s17 = sld [smem:[%s4287_s0 + %s3440_s14]]   ;;  %s3443_s26 = smov 6  }
   0x5   :  { %s3503_s21 = sld [smem:[%s4287_s0 + %s3441_s18]]   ;;  %s3444_s30 = smov 7  }
   0x6   :  { %s3508_s25 = sld [smem:[%s4287_s0 + %s3442_s22]]   ;;  %s3445_s4 = smov 8  }
   0x7   :  { %4303 = sst [smem:[#allocation7_spill]] %s3483_s5  ;;  %s3446_s10 = smov 9  }
   0x8   :  { %4304 = sst [smem:[#allocation8_spill]] %s3488_s9  ;;  %s3447_s15 = smov 10  }
   0x9   :  { %s3513_s29 = sld [smem:[%s4287_s0 + %s3443_s26]]   ;;  %s3448_s20 = smov 11  }
   0xa   :  { %s3518_s3 = sld [smem:[%s4287_s0 + %s3444_s30]]   ;;  %s3449_s26 = smov 12  }
   0xb   :  { %s3523_s8 = sld [smem:[%s4287_s0 + %s3445_s4]]   ;;  %s3450_s1 = smov 13  }
   0xc   :  { %s3528_s14 = sld [smem:[%s4287_s0 + %s3446_s10]]   ;;  %s3451_s7 = smov 14  }
   0xd   :  { %s3533_s19 = sld [smem:[%s4287_s0 + %s3447_s15]]   ;;  %s3452_s15 = smov 15  }
   0xe   :  { %s3538_s24 = sld [smem:[%s4287_s0 + %s3448_s20]]   ;;  %s3453_s22 = smov 16  }
   0xf   :  { %s3543_s30 = sld [smem:[%s4287_s0 + %s3449_s26]]   ;;  %s3454_s28 = smov 17  }
  0x10   :  { %4305 = sst [smem:[#allocation9_spill]] %s3518_s3 }
  0x11   :  { %4306 = sst [smem:[#allocation10_spill]] %s3523_s8 }
  0x12   :  { %s3548_s6 = sld [smem:[%s4287_s0 + %s3450_s1]]  }
  0x13   :  { %4307 = sst [smem:[#allocation11_spill]] %s3533_s19 }
  0x14   :  { %s3553_s12 = sld [smem:[%s4287_s0 + %s3451_s7]]   ;;  %s3455_s7 = smov 18  }
  0x15   :  { %s3558_s20 = sld [smem:[%s4287_s0 + %s3452_s15]]   ;;  %s3456_s15 = smov 19  }
  0x16   :  { %s3563_s27 = sld [smem:[%s4287_s0 + %s3453_s22]]   ;;  %s3457_s22 = smov 20  }
  0x17   :  { %s3568_s4 = sld [smem:[%s4287_s0 + %s3454_s28]]   ;;  %s3458_s28 = smov 21  }
  0x18   :  { %4308 = sst [smem:[#allocation12_spill]] %s3548_s6 }
  0x19   :  { %s3573_s19 = sld [smem:[%s4287_s0 + %s3455_s7]]   ;;  %s3459_s7 = smov 22  }
  0x1a   :  { %4309 = sst [smem:[#allocation13_spill]] %s3553_s12 }
  0x1b   :  { %s3578_s12 = sld [smem:[%s4287_s0 + %s3456_s15]]   ;;  %s3460_s15 = smov 23  }
  0x1c   :  { %4310 = sst [smem:[#allocation14_spill]] %s3563_s27 }
  0x1d   :  { %4311 = sst [smem:[#allocation15_spill]] %s3568_s4 }
  0x1e   :  { %s3583_s27 = sld [smem:[%s4287_s0 + %s3457_s22]]   ;;  %s3461_s22 = smov 24  }
  0x1f   :  { %4312 = sst [smem:[#allocation16_spill]] %s3573_s19 }
  0x20   :  { %s3588_s4 = sld [smem:[%s4287_s0 + %s3458_s28]]   ;;  %s3462_s28 = smov 25  }
  0x21   :  { %4313 = sst [smem:[#allocation17_spill]] %s3578_s12 }
  0x22   :  { %s3593_s19 = sld [smem:[%s4287_s0 + %s3459_s7]]   ;;  %s3463_s7 = smov 26  }
  0x23   :  { %s3598_s12 = sld [smem:[%s4287_s0 + %s3460_s15]]   ;;  %s3464_s15 = smov 27  }
  0x24   :  { %4314 = sst [smem:[#allocation18_spill]] %s3583_s27 }
  0x25   :  { %s3603_s27 = sld [smem:[%s4287_s0 + %s3461_s22]]   ;;  %s3465_s22 = smov 28  }
  0x26   :  { %4315 = sst [smem:[#allocation19_spill]] %s3588_s4 }
  0x27   :  { %s3608_s4 = sld [smem:[%s4287_s0 + %s3462_s28]]   ;;  %s3466_s28 = smov 29  }
  0x28   :  { %4316 = sst [smem:[#allocation20_spill]] %s3593_s19 }
  0x29   :  { %4317 = sst [smem:[#allocation21_spill]] %s3598_s12 }
  0x2a   :  { %s3613_s19 = sld [smem:[%s4287_s0 + %s3463_s7]]   ;;  %s3467_s7 = smov 30  }
  0x2b   :  { %4318 = sst [smem:[#allocation22_spill]] %s3603_s27 }
  0x2c   :  { %s3618_s12 = sld [smem:[%s4287_s0 + %s3464_s15]]  }
  0x2d   :  { %4319 = sst [smem:[#allocation23_spill]] %s3608_s4 }
  0x2e   :  { %s3623_s27 = sld [smem:[%s4287_s0 + %s3465_s22]]  }
  0x2f   :  { %s3628_s4 = sld [smem:[%s4287_s0 + %s3466_s28]]  }
  0x30   :  { %4320 = sst [smem:[#allocation24_spill]] %s3613_s19 }
  0x31   :  { %s3633_s19 = sld [smem:[%s4287_s0 + %s3467_s7]]  }
  0x35   :  { %4321 = sst [smem:[#allocation25_spill]] %s3628_s4 }
  0x36   :  { %66 = vsyncpa [#allocation5], 0 }
  0x37   :  { %68 = vsyncpa [#allocation5 + $0x1], 0  ;;  %s3635_s15 = smov 0   ;;  %s3637_s16 = smov 0  }
  0x38   :  { %s3639_s18 = smov 0   ;;  %s3641_s22 = smov 0  }
  0x39 LB: > { %s4322_s8 = sld [smem:[#allocation10_spill]]  ;;  %s3656_s0 = sadd.s32 4294967295, %s3432_s22   ;;  %s3428_s18 = sphi %s3639_s18, %s4349_s18   ;;  %s3424_s16 = sphi %s3637_s16, %s4348_s16   ;;  %s3420_s15 = sphi %s3635_s15, %s4347_s15   ;;  %s3432_s22 = sphi %s3641_s22, %s4350_s22  }
  0x3a   : > { %s4323_s6 = sld [smem:[#allocation12_spill]]  ;;  %s3069_s23 = sadd.s32 4294967294, %s3432_s22  }
  0x3b   : > { %s4324_s3 = sld [smem:[#allocation9_spill]]  ;;  %s3660_s26 = sadd.s32 1, %s3432_s22  }
  0x3c   : > { %s726_s28 = sadd.s32 1, %s3428_s18  ;;  %s723_s1 = ssub.s32 %s3432_s22, %s3660_s26 }
  0x3d   : > { %p736_p0 = scmp.ne.s32.totalorder %s3428_s18, %s3424_s16  ;;  %p724_p1 = scmp.eq.s32.totalorder %s723_s1, 0 }
  0x3e   : > { %p737_p2 = scmp.eq.s32.totalorder %s3656_s0, 1  ;;  %p742_p3 = scmp.ne.s32.totalorder %s3424_s16, %s3420_s15 }
  0x3f   : > { %p743_p4 = scmp.eq.s32.totalorder %s3069_s23, 1  ;;  %p3072_p7 = scmp.ge.s32.totalorder %s3432_s22, 1 }
  0x40   : > { %s3671_s2 = scalar_select %p724_p1, %s3428_s18, %s726_s28  }
  0x41   : > { %p3673_p5 = por %p737_p2, %p736_p0  ;;  %p3677_p6 = por %p743_p4, %p742_p3 }
  0x42   : > { %p863_p8 = scmp.lt.s32.totalorder %s3432_s22, 3 }
  0x44   : > { %p864_p9 = pnand %p3072_p7, %p863_p8 }
  0x45   : > { %p948_p10 = scmp.lt.s32.totalorder (!%p864_p9), %s3656_s0, 1  ;;  %s4293_s11 = sand.u32 (!%p864_p9), 1, %s3424_s16  }
  0x46   : > { %867 = sbr.rel (%p864_p9) target bundleno = 2679 (0xa77), region = 140  ;;  %s3693_s23 = sshll.u32 (!%p864_p9), %s4293_s11, 3 }
  0x47   : > { %s4327_s9 = sld [smem:[#allocation8_spill]] (!%p864_p9) }
  0x48   : > { %s4328_s5 = sld [smem:[#allocation7_spill]] (!%p864_p9) }
  0x4b   : > { %v970_v0 = vld [vmem:[%s3498_s17 + $0x38] sm:$0xff]  ;;  %v969_v3 = vld [vmem:[%s3498_s17 + $0x30] sm:$0xff]  ;;  %v968_v6 = vld [vmem:[%s3498_s17 + $0x28] sm:$0xff]  ;;  %s949_s28 = scalar_select %p948_p10, %s3656_s0, 1  ;;  %vm983_vm0 = vcmask 261120   ;;  %vm1318_vm1 = vcmask 64512  }
  0x4c   : > { %v974_v1 = vld [vmem:[%s3498_s17 + $0x58] sm:$0xff]  ;;  %1019 = vmatpush.msra.mxu1 %v970_v0  ;;  %v973_v4 = vld [vmem:[%s3498_s17 + $0x50] sm:$0xff]  ;;  %v972_v7 = vld [vmem:[%s3498_s17 + $0x48] sm:$0xff]  ;;  %vm1572_vm2 = vcmask 130048   ;;  %vm1574_vm3 = vcmask 195584  }
  0x4d   : > { %v978_v2 = vld [vmem:[%s3498_s17 + $0x78] sm:$0xff]  ;;  %1039 = vmatpush.msra.mxu2 %v974_v1  ;;  %v977_v5 = vld [vmem:[%s3498_s17 + $0x70] sm:$0xff]  ;;  %v976_v8 = vld [vmem:[%s3498_s17 + $0x68] sm:$0xff]  ;;  %s3701_s1 = sshll.u32 %s949_s28, 3 }
  0x4e   : > { %1059 = vmatpush.msra.mxu3 %v978_v2  ;;  %1020 = vmatpush.msra.mxu1 %v969_v3  ;;  %v967_v9 = vld [vmem:[%s3498_s17 + $0x20] sm:$0xff]  ;;  %v966_v11 = vld [vmem:[%s3498_s17 + $0x18] sm:$0xff]  ;;  %s955_s11 = scalar_lea.vmem %s4327_s9, %s3701_s1  ;;  %v965_v17 = vld [vmem:[%s3498_s17 + $0x10] sm:$0xff]  ;;  %s959_s28 = scalar_lea.vmem %s3493_s13, %s3701_s1 }
  0x4f   : > { %1040 = vmatpush.msra.mxu2 %v973_v4  ;;  %v971_v10 = vld [vmem:[%s3498_s17 + $0x40] sm:$0xff]  ;;  %999 = vmatpush.msra.mxu0 %v966_v11  ;;  %v1090_v14 = vld [vmem:[%s3503_s21 + $0x38] sm:$0xff]  ;;  %v1089_v18 = vld [vmem:[%s3503_s21 + $0x30] sm:$0xff] }
  0x50   : > { %1060 = vmatpush.msra.mxu3 %v977_v5  ;;  %1021 = vmatpush.msra.mxu1 %v968_v6  ;;  %v975_v12 = vld [vmem:[%s3498_s17 + $0x60] sm:$0xff]  ;;  %v1094_v15 = vld [vmem:[%s3503_s21 + $0x58] sm:$0xff]  ;;  %v1093_v19 = vld [vmem:[%s3503_s21 + $0x50] sm:$0xff] }
  0x51   : > { %1041 = vmatpush.msra.mxu2 %v972_v7  ;;  %v3707_v13 = vld [vmem:[%s955_s11] sm:$0xff]  ;;  %v1098_v16 = vld [vmem:[%s3503_s21 + $0x78] sm:$0xff]  ;;  %v1097_v20 = vld [vmem:[%s3503_s21 + $0x70] sm:$0xff]  ;;  %s951_s11 = scalar_lea.vmem %s4328_s5, %s3701_s1  ;;  %1000 = vmatpush.msra.mxu0 %v965_v17  ;;  %s3468_s1 = smov 8  }
  0x52   : > { %1061 = vmatpush.msra.mxu3 %v976_v8  ;;  %1022 = vmatpush.msra.mxu1 %v967_v9  ;;  %v964_v21 = vld [vmem:[%s3498_s17 + $0x8] sm:$0xff]  ;;  %v963_v25 = vld [vmem:[%s3498_s17] sm:$0xff]  ;;  %v1086_v30 = vld [vmem:[%s3503_s21 + $0x18] sm:$0xff]  ;;  %s3963_s5 = smov 0  }
  0x53   : > { %1042 = vmatpush.msra.mxu2 %v971_v10  ;;  %3078 = vmatmul.msk.f32.vlgmr.msra.gmra.mxu1 %vm983_vm0, %v3707_v13  ;;  %v1088_v22 = vld [vmem:[%s3503_s21 + $0x28] sm:$0xff]  ;;  %v1087_v26 = vld [vmem:[%s3503_s21 + $0x20] sm:$0xff]  ;;  %v1209_v31 = vld [vmem:[%s3508_s25 + $0x38] sm:$0xff] }
  0x54   : > { %1062 = vmatpush.msra.mxu3 %v975_v12  ;;  %3079 = vmatmul.msk.f32.vlgmr.msra.gmra.mxu2 %vm983_vm0, %v3707_v13  ;;  %v1092_v23 = vld [vmem:[%s3503_s21 + $0x48] sm:$0xff]  ;;  %v1091_v27 = vld [vmem:[%s3503_s21 + $0x40] sm:$0xff]  ;;  %v1085_v32 = vld [vmem:[%s3503_s21 + $0x10] sm:$0xff] }
  0x55   : > { %3080 = vmatmul.msk.f32.vlgmr.msra.gmra.mxu3 %vm983_vm0, %v3707_v13  ;;  %1138 = vmatpush.msrb.mxu1 %v1090_v14  ;;  %v1096_v24 = vld [vmem:[%s3503_s21 + $0x68] sm:$0xff]  ;;  %v1095_v28 = vld [vmem:[%s3503_s21 + $0x60] sm:$0xff]  ;;  %v1208_v35 = vld [vmem:[%s3508_s25 + $0x30] sm:$0xff] }
  0x56   : > { %1158 = vmatpush.msrb.mxu2 %v1094_v15  ;;  %1178 = vmatpush.msrb.mxu3 %v1098_v16  ;;  %v3732_v29 = vld [vmem:[%s951_s11] sm:$0xff]  ;;  %v1084_v33 = vld [vmem:[%s3503_s21 + $0x8] sm:$0xff]  ;;  %v1213_v37 = vld [vmem:[%s3508_s25 + $0x58] sm:$0xff]  ;;  %s3469_s11 = smov 16  }
  0x57   : > { %1139 = vmatpush.msrb.mxu1 %v1089_v18  ;;  %1001 = vmatpush.msra.mxu0 %v964_v21  ;;  %v1083_v34 = vld [vmem:[%s3503_s21] sm:$0xff]  ;;  %v1207_v36 = vld [vmem:[%s3508_s25 + $0x28] sm:$0xff]  ;;  %v1217_v38 = vld [vmem:[%s3508_s25 + $0x78] sm:$0xff] }
  0x58   : > { %1159 = vmatpush.msrb.mxu2 %v1093_v19  ;;  %1179 = vmatpush.msrb.mxu3 %v1097_v20  ;;  %v1206_v39 = vld [vmem:[%s3508_s25 + $0x20] sm:$0xff]  ;;  %v1205_v40 = vld [vmem:[%s3508_s25 + $0x18] sm:$0xff]  ;;  %v1212_v41 = vld [vmem:[%s3508_s25 + $0x50] sm:$0xff] }
  0x59   : > { %1140 = vmatpush.msrb.mxu1 %v1088_v22  ;;  %1002 = vmatpush.msra.mxu0 %v963_v25  ;;  %v1216_v42 = vld [vmem:[%s3508_s25 + $0x70] sm:$0xff]  ;;  %v1211_v44 = vld [vmem:[%s3508_s25 + $0x48] sm:$0xff]  ;;  %v1210_v47 = vld [vmem:[%s3508_s25 + $0x40] sm:$0xff] }
  0x5a   : > { %1160 = vmatpush.msrb.mxu2 %v1092_v23  ;;  %1180 = vmatpush.msrb.mxu3 %v1096_v24  ;;  %v1204_v43 = vld [vmem:[%s3508_s25 + $0x10] sm:$0xff]  ;;  %v1215_v45 = vld [vmem:[%s3508_s25 + $0x68] sm:$0xff]  ;;  %v1214_v48 = vld [vmem:[%s3508_s25 + $0x60] sm:$0xff] }
  0x5b   : > { %1141 = vmatpush.msrb.mxu1 %v1087_v26  ;;  %3077 = vmatmul.msk.f32.vlgmr.msra.gmra.mxu0 %vm983_vm0, %v3707_v13  ;;  %v1203_v46 = vld [vmem:[%s3508_s25 + $0x8] sm:$0xff]  ;;  %v1202_v49 = vld [vmem:[%s3508_s25] sm:$0xff] }
  0x5c   : > { %1161 = vmatpush.msrb.mxu2 %v1091_v27  ;;  %1181 = vmatpush.msrb.mxu3 %v1095_v28  ;;  %v3249_v53 = vld [vmem:[%s4324_s3 + $0x1] ss:$0 sm:$0xff]  ;;  %v3250_v59 = vld [vmem:[%s4324_s3 + $0x2] ss:$0 sm:$0xff]  ;;  %v3251_v60 = vld [vmem:[%s4324_s3 + $0x3] ss:$0 sm:$0xff] }
  0x5d   : > { %3082 = vmatmul.msk.f32.vlgmr.msrb.gmra.mxu1 %vm983_vm0, %v3732_v29  ;;  %3083 = vmatmul.msk.f32.vlgmr.msrb.gmra.mxu2 %vm983_vm0, %v3732_v29  ;;  %v3245_v54 = vld [vmem:[%s3513_s29 + $0x1] ss:$0 sm:$0xff]  ;;  %v3252_v61 = vld [vmem:[%s4324_s3] ss:$0 sm:$0xff]  ;;  %v3246_v62 = vld [vmem:[%s3513_s29 + $0x2] ss:$0 sm:$0xff] }
  0x5e   : > { %3084 = vmatmul.msk.f32.vlgmr.msrb.gmra.mxu3 %vm983_vm0, %v3732_v29  ;;  %1118 = vmatpush.msrb.mxu0 %v1086_v30  ;;  %v3248_v63 = vld [vmem:[%s3513_s29] ss:$0 sm:$0xff]  ;;  %v3247_v1 = vld [vmem:[%s3513_s29 + $0x3] ss:$0 sm:$0xff]  ;;  %v3253_v10 = vld [vmem:[%s4322_s8 + $0x1] ss:$0 sm:$0xff] }
  0x5f   : > { %1254 = vmatpush.msra.mxu1 %v1209_v31  ;;  %1274 = vmatpush.msra.mxu2 %v1213_v37  ;;  %v3254_v14 = vld [vmem:[%s4322_s8] ss:$0 sm:$0xff]  ;;  %v3255_v17 = vld [vmem:[%s4322_s8 + $0x2] ss:$0 sm:$0xff]  ;;  %v3256_v18 = vld [vmem:[%s4322_s8 + $0x3] ss:$0 sm:$0xff] }
  0x60   : > { %1119 = vmatpush.msrb.mxu0 %v1085_v32  ;;  %1294 = vmatpush.msra.mxu3 %v1217_v38  ;;  %v3794_v23 = vld [vmem:[%s959_s28] sm:$0xff]  ;;  %s3470_s28 = smov 24   ;;  %s4332_s3 = sld [smem:[#allocation15_spill]] }
  0x61   : > { %1255 = vmatpush.msra.mxu1 %v1208_v35  ;;  %1275 = vmatpush.msra.mxu2 %v1212_v41 }
  0x62   : > { %1120 = vmatpush.msrb.mxu0 %v1084_v33  ;;  %1295 = vmatpush.msra.mxu3 %v1216_v42 }
  0x63   : > { %1256 = vmatpush.msra.mxu1 %v1207_v36  ;;  %1276 = vmatpush.msra.mxu2 %v1211_v44 }
  0x64   : > { %1121 = vmatpush.msrb.mxu0 %v1083_v34  ;;  %1296 = vmatpush.msra.mxu3 %v1215_v45 }
  0x65   : > { %3081 = vmatmul.msk.f32.vlgmr.msrb.gmra.mxu0 %vm983_vm0, %v3732_v29  ;;  %1257 = vmatpush.msra.mxu1 %v1206_v39 }
  0x66   : > { %3086 = vmatmul.msk.f32.vlgmr.msra.gmra.mxu1 %vm983_vm0, %v3732_v29  ;;  %1234 = vmatpush.msra.mxu0 %v1205_v40 }
  0x67   : > { %1277 = vmatpush.msra.mxu2 %v1210_v47  ;;  %1297 = vmatpush.msra.mxu3 %v1214_v48 }
  0x68   : > { %1235 = vmatpush.msra.mxu0 %v1204_v43  ;;  %3087 = vmatmul.msk.f32.vlgmr.msra.gmra.mxu2 %vm983_vm0, %v3732_v29 }
  0x69   : > { %3088 = vmatmul.msk.f32.vlgmr.msra.gmra.mxu3 %vm983_vm0, %v3732_v29 }
  0x6a   : > { %1236 = vmatpush.msra.mxu0 %v1203_v46 }
  0x6c   : > { %1237 = vmatpush.msra.mxu0 %v1202_v49 }
  0x6d   : > { %3085 = vmatmul.msk.f32.vlgmr.msra.gmra.mxu0 %vm983_vm0, %v3732_v29 }
  0xd0   : > { %v1024_v50 = vpop.f32.mrf.mxu1 }
  0xd1   : > { %v1080_v58 = vadd.f32 %v3245_v54, %v1024_v50 }
  0xd7   : > { %v1044_v51 = vpop.f32.mrf.mxu2 }
  0xd8   : > { %v1064_v52 = vpop.f32.mrf.mxu3  ;;  %v1004_v55 = vpop.f32.mrf.mxu0  ;;  %v1081_v7 = vadd.f32 %v3246_v62, %v1044_v51 }
  0xd9   : > { %v1079_v8 = vadd.f32 %v3248_v63, %v1004_v55  ;;  %v1082_v9 = vadd.f32 %v3247_v1, %v1064_v52 }
  0xda   : > { %v1143_v56 = vpop.f32.mrf.mxu1 }
  0xdb   : > { %v1199_v57 = vadd.f32 %v3249_v53, %v1143_v56 }
  0xdd   : > { %3091 = vmatpush.xpose.msk.msrb.mxu1 %vm1318_vm1, %v1199_v57 }
  0xe0   : > { %v1163_v0 = vpop.f32.mrf.mxu2  ;;  %3092 = vmatmul.msk.f32.vlgmr.msrb.gmra.mxu1 %vm1318_vm1, %v1080_v58 }
  0xe1   : > { %v1200_v2 = vadd.f32 %v3250_v59, %v1163_v0  ;;  %v1183_v3 = vpop.f32.mrf.mxu3 }
  0xe2   : > { %v1201_v4 = vadd.f32 %v3251_v60, %v1183_v3  ;;  %v1123_v5 = vpop.f32.mrf.mxu0 }
  0xe3   : > { %v1198_v6 = vadd.f32 %v3252_v61, %v1123_v5  ;;  %3093 = vmatpush.xpose.msk.msrb.mxu2 %vm1318_vm1, %v1200_v2  ;;  %v1259_v11 = vpop.f32.mrf.mxu1 }
  0xe4   : > { %3095 = vmatpush.xpose.msk.msrb.mxu3 %vm1318_vm1, %v1201_v4  ;;  %v1315_v12 = vadd.f32 %v3253_v10, %v1259_v11  ;;  %v1613_v10 = vld [vmem:[%s3543_s30 + $0x30] sm:$0xff] }
  0xe5   : > { %3089 = vmatpush.xpose.msk.msrb.mxu0 %vm1318_vm1, %v1198_v6  ;;  %v1617_v11 = vld [vmem:[%s3543_s30 + $0x50] sm:$0xff] }
  0xe6   : > { %3094 = vmatmul.msk.f32.vlgmr.msrb.gmra.mxu2 %vm1318_vm1, %v1081_v7  ;;  %1508 = vmatpush.msra.mxu1 %v1315_v12  ;;  %v1612_v12 = vld [vmem:[%s3543_s30 + $0x28] sm:$0xff] }
  0xe7   : > { %3096 = vmatmul.msk.f32.vlgmr.msrb.gmra.mxu3 %vm1318_vm1, %v1082_v9  ;;  %v1618_v9 = vld [vmem:[%s3543_s30 + $0x58] sm:$0xff] }
  0xe8   : > { %3090 = vmatmul.msk.f32.vlgmr.msrb.gmra.mxu0 %vm1318_vm1, %v1079_v8  ;;  %v1614_v8 = vld [vmem:[%s3543_s30 + $0x38] sm:$0xff] }
  0xea   : > { %v1239_v15 = vpop.f32.mrf.mxu0 }
  0xeb   : > { %v1314_v16 = vadd.f32 %v3254_v14, %v1239_v15  ;;  %v1279_v19 = vpop.f32.mrf.mxu2  ;;  %v1616_v14 = vld [vmem:[%s3543_s30 + $0x48] sm:$0xff]  ;;  %v1611_v15 = vld [vmem:[%s3543_s30 + $0x20] sm:$0xff] }
  0xec   : > { %v1316_v20 = vadd.f32 %v3255_v17, %v1279_v19  ;;  %v1299_v21 = vpop.f32.mrf.mxu3  ;;  %v1730_v17 = vld [vmem:[%s4323_s6 + $0x38] sm:$0xff]  ;;  %v1729_v19 = vld [vmem:[%s4323_s6 + $0x30] sm:$0xff] }
  0xed   : > { %1485 = vmatpush.msra.mxu0 %v1314_v16  ;;  %v1317_v22 = vadd.f32 %v3256_v18, %v1299_v21  ;;  %v1615_v16 = vld [vmem:[%s3543_s30 + $0x40] sm:$0xff]  ;;  %v1734_v18 = vld [vmem:[%s4323_s6 + $0x58] sm:$0xff] }
  0xee   : > { %1531 = vmatpush.msra.mxu2 %v1316_v20  ;;  %v1733_v20 = vld [vmem:[%s4323_s6 + $0x50] sm:$0xff]  ;;  %v1579_v21 = vld [vmem:[%s3528_s14 + $0x18] sm:$0xff] }
  0xef   : > { %1554 = vmatpush.msra.mxu3 %v1317_v22  ;;  %v1578_v22 = vld [vmem:[%s3528_s14 + $0x10] sm:$0xff]  ;;  %1599 = vmatpush.msrb.mxu0 %v1579_v21 }
  0xf0   : > { %1659 = vmatpush.msrb.mxu2 %v1614_v8 }
  0xf1   : > { %1679 = vmatpush.msrb.mxu3 %v1618_v9  ;;  %1600 = vmatpush.msrb.mxu0 %v1578_v22 }
  0xf2   : > { %1660 = vmatpush.msrb.mxu2 %v1613_v10 }
  0xf3   : > { %1680 = vmatpush.msrb.mxu3 %v1617_v11 }
  0xf4   : > { %1661 = vmatpush.msrb.mxu2 %v1612_v12 }
  0xf5   : > { %1681 = vmatpush.msrb.mxu3 %v1616_v14 }
  0xf6   : > { %1662 = vmatpush.msrb.mxu2 %v1611_v15 }
  0xf7   : > { %1682 = vmatpush.msrb.mxu3 %v1615_v16 }
 0x15d   : > { %v1368_v24 = vpop.f32.mrf.mxu1 }
 0x15e   : > { %v1369_v25 = vadd.f32 %v1368_v24, %v3794_v23  ;;  %v1610_v24 = vld [vmem:[%s3543_s30 + $0x18] sm:$0xff] }
 0x15f   : > { %1639 = vmatpush.msrb.mxu1 %v1610_v24 }
 0x160   : > { %v1426_v26 = vsel %vm1318_vm1, %v1369_v25, -inf }
 0x161   : > { %1427 = vmax.xlane.f32.xlu1 %v1426_v26  ;;  %v1732_v26 = vld [vmem:[%s4323_s6 + $0x48] sm:$0xff] }
 0x165   : > { %v1342_v27 = vpop.f32.mrf.mxu0 }
 0x166   : > { %v1343_v28 = vadd.f32 %v1342_v27, %v3794_v23  ;;  %v1577_v27 = vld [vmem:[%s3528_s14 + $0x8] sm:$0xff] }
 0x167   : > { %1601 = vmatpush.msrb.mxu0 %v1577_v27 }
 0x168   : > { %v1423_v30 = vsel %vm1318_vm1, %v1343_v28, -inf }
 0x169   : > { %v1394_v31 = vpop.f32.mrf.mxu2  ;;  %1424 = vmax.xlane.f32.xlu1 %v1423_v30  ;;  %v1727_v30 = vld [vmem:[%s4323_s6 + $0x20] sm:$0xff] }
 0x16a   : > { %v1395_v32 = vadd.f32 %v1394_v31, %v3794_v23  ;;  %v1420_v34 = vpop.f32.mrf.mxu3  ;;  %v1731_v31 = vld [vmem:[%s4323_s6 + $0x40] sm:$0xff] }
 0x16b   : > { %v1421_v35 = vadd.f32 %v1420_v34, %v3794_v23  ;;  %v1850_v34 = vld [vmem:[%s3538_s24 + $0x58] sm:$0xff] }
 0x16c   : > { %v1429_v33 = vsel %vm1318_vm1, %v1395_v32, -inf }
 0x16d   : > { %1430 = vmax.xlane.f32.xlu0 %v1429_v33  ;;  %v1432_v36 = vsel %vm1318_vm1, %v1421_v35, -inf  ;;  %v1846_v33 = vld [vmem:[%s3538_s24 + $0x38] sm:$0xff] }
 0x175   : > { %1433 = vmax.xlane.f32.xlu0 %v1432_v36  ;;  %v1845_v36 = vld [vmem:[%s3538_s24 + $0x30] sm:$0xff] }
 0x1d4   : > { %v1428_v37 = vpop.xlane.xlu1 %1427 }
 0x1d5   : > { %v1436_v38 = vsub.f32 %v1369_v25, %v1428_v37  ;;  %v1728_v25 = vld [vmem:[%s4323_s6 + $0x28] sm:$0xff]  ;;  %v1849_v37 = vld [vmem:[%s3538_s24 + $0x50] sm:$0xff] }
 0x1d7   : > { %v1441_v39 = vmul.f32 1.442695, %v1436_v38  ;;  %v1576_v38 = vld [vmem:[%s3528_s14] sm:$0xff] }
 0x1d8   : > { %1602 = vmatpush.msrb.mxu0 %v1576_v38  ;;  %v3263_v38 = vld [vmem:[%s3558_s20 + $0x3] ss:$0 sm:$0xff] }
 0x1d9   : > { %3270 = vpow2.f32 %v1441_v39  ;;  %v1844_v39 = vld [vmem:[%s3538_s24 + $0x28] sm:$0xff] }
 0x1dc   : > { %v1425_v40 = vpop.xlane.xlu1 %1424 }
 0x1dd   : > { %v1435_v41 = vsub.f32 %v1343_v28, %v1425_v40  ;;  %v1609_v28 = vld [vmem:[%s3543_s30 + $0x10] sm:$0xff]  ;;  %v1622_v40 = vld [vmem:[%s3543_s30 + $0x78] sm:$0xff] }
 0x1de   : > { %1640 = vmatpush.msrb.mxu1 %v1609_v28 }
 0x1df   : > { %v3271_v42 = vpop.eup %3270  ;;  %v1439_v43 = vmul.f32 1.442695, %v1435_v41  ;;  %v1621_v41 = vld [vmem:[%s3543_s30 + $0x70] sm:$0xff] }
 0x1e0   : > { %v1431_v44 = vpop.xlane.xlu0 %1430  ;;  %v1450_v45 = vsel %vm1318_vm1, %v3271_v42, 0.0 }
 0x1e1   : > { %3272 = vpow2.f32 %v1439_v43  ;;  %v1437_v46 = vsub.f32 %v1395_v32, %v1431_v44  ;;  %1451 = vadd.xlane.f32.xlu0 %v1450_v45  ;;  %v1608_v32 = vld [vmem:[%s3543_s30 + $0x8] sm:$0xff]  ;;  %v1843_v44 = vld [vmem:[%s3538_s24 + $0x20] sm:$0xff] }
 0x1e2   : > { %1641 = vmatpush.msrb.mxu1 %v1608_v32  ;;  %v1848_v43 = vld [vmem:[%s3538_s24 + $0x48] sm:$0xff] }
 0x1e3   : > { %v1443_v47 = vmul.f32 1.442695, %v1437_v46  ;;  %v1620_v45 = vld [vmem:[%s3543_s30 + $0x68] sm:$0xff]  ;;  %v1725_v46 = vld [vmem:[%s4323_s6 + $0x10] sm:$0xff] }
 0x1e5   : > { %3274 = vpow2.f32 %v1443_v47  ;;  %v1847_v47 = vld [vmem:[%s3538_s24 + $0x40] sm:$0xff] }
 0x1e7   : > { %v3273_v48 = vpop.eup %3272 }
 0x1e8   : > { %v1434_v49 = vpop.xlane.xlu0 %1433  ;;  %v1447_v50 = vsel %vm1318_vm1, %v3273_v48, 0.0 }
 0x1e9   : > { %v1438_v51 = vsub.f32 %v1421_v35, %v1434_v49  ;;  %1448 = vadd.xlane.f32.xlu1 %v1447_v50  ;;  %v1607_v35 = vld [vmem:[%s3543_s30] sm:$0xff]  ;;  %v1724_v49 = vld [vmem:[%s4323_s6 + $0x8] sm:$0xff] }
 0x1ea   : > { %1642 = vmatpush.msrb.mxu1 %v1607_v35  ;;  %v1723_v50 = vld [vmem:[%s4323_s6] sm:$0xff] }
 0x1eb   : > { %v3275_v52 = vpop.eup %3274  ;;  %v1445_v53 = vmul.f32 1.442695, %v1438_v51  ;;  %v1842_v51 = vld [vmem:[%s3538_s24 + $0x18] sm:$0xff] }
 0x1ec   : > { %v1453_v54 = vsel %vm1318_vm1, %v3275_v52, 0.0 }
 0x1ed   : > { %3276 = vpow2.f32 %v1445_v53  ;;  %1454 = vadd.xlane.f32.xlu2 %v1453_v54  ;;  %v1840_v53 = vld [vmem:[%s3538_s24 + $0x8] sm:$0xff]  ;;  %v1839_v54 = vld [vmem:[%s3538_s24] sm:$0xff] }
 0x1f3   : > { %v3277_v55 = vpop.eup %3276 }
 0x1f4   : > { %v1456_v56 = vsel %vm1318_vm1, %v3277_v55, 0.0 }
 0x1f5   : > { %1457 = vadd.xlane.f32.xlu2 %v1456_v56 }
 0x254   : > { %v1452_v57 = vpop.xlane.xlu0 %1451 }
 0x255   : > { %3278 = vrcp.f32 %v1452_v57 }
 0x25b   : > { %v3279_v58 = vpop.eup %3278 }
 0x25c   : > { %v1464_v59 = vmul.f32 %v3279_v58, %v3271_v42  ;;  %v1449_v60 = vpop.xlane.xlu1 %1448  ;;  %v1726_v42 = vld [vmem:[%s4323_s6 + $0x18] sm:$0xff] }
 0x25d   : > { %3280 = vrcp.f32 %v1449_v60 }
 0x25e   : > { %3098 = vmatmul.msk.f32.vlgmr.msra.gmra.mxu1 %vm1318_vm1, %v1464_v59 }
 0x25f   : > { %1755 = vmatpush.msra.mxu1 %v1726_v42 }
 0x260   : > { %v1455_v61 = vpop.xlane.xlu2 %1454 }
 0x261   : > { %3282 = vrcp.f32 %v1455_v61  ;;  %1756 = vmatpush.msra.mxu1 %v1725_v46  ;;  %v1738_v61 = vld [vmem:[%s4323_s6 + $0x78] sm:$0xff] }
 0x263   : > { %v3281_v62 = vpop.eup %3280  ;;  %1757 = vmatpush.msra.mxu1 %v1724_v49 }
 0x264   : > { %v1463_v63 = vmul.f32 %v3281_v62, %v3273_v48  ;;  %v1619_v48 = vld [vmem:[%s3543_s30 + $0x60] sm:$0xff] }
 0x265   : > { %1758 = vmatpush.msra.mxu1 %v1723_v50 }
 0x266   : > { %3097 = vmatmul.msk.f32.vlgmr.msra.gmra.mxu0 %vm1318_vm1, %v1463_v63  ;;  %3102 = vmatmul.msk.f32.vlgmr.msrb.gmra.mxu1 %vm983_vm0, %v3732_v29  ;;  %v1737_v63 = vld [vmem:[%s4323_s6 + $0x70] sm:$0xff] }
 0x267   : > { %v3283_v0 = vpop.eup %3282  ;;  %1699 = vmatpush.msra.mxu0 %v1622_v40  ;;  %1867 = vmatpush.msrb.mxu1 %v1842_v51 }
 0x268   : > { %v1465_v1 = vmul.f32 %v3283_v0, %v3275_v52  ;;  %v1458_v2 = vpop.xlane.xlu2 %1457  ;;  %v1841_v52 = vld [vmem:[%s3538_s24 + $0x10] sm:$0xff]  ;;  %v1736_v0 = vld [vmem:[%s4323_s6 + $0x68] sm:$0xff] }
 0x269   : > { %3284 = vrcp.f32 %v1458_v2  ;;  %1700 = vmatpush.msra.mxu0 %v1621_v41  ;;  %1868 = vmatpush.msrb.mxu1 %v1841_v52  ;;  %v1854_v2 = vld [vmem:[%s3538_s24 + $0x78] sm:$0xff] }
 0x26a   : > { %3099 = vmatmul.msk.f32.vlgmr.msra.gmra.mxu2 %vm1318_vm1, %v1465_v1  ;;  %v1735_v1 = vld [vmem:[%s4323_s6 + $0x60] sm:$0xff] }
 0x26b   : > { %1775 = vmatpush.msra.mxu2 %v1730_v17  ;;  %1701 = vmatpush.msra.mxu0 %v1620_v45 }
 0x26c   : > { %1869 = vmatpush.msrb.mxu1 %v1840_v53 }
 0x26d   : > { %1776 = vmatpush.msra.mxu2 %v1729_v19  ;;  %1702 = vmatpush.msra.mxu0 %v1619_v48 }
 0x26e   : > { %3106 = vmatmul.msk.f32.vlgmr.msra.gmra.mxu1 %vm983_vm0, %v3732_v29 }
 0x26f   : > { %v3285_v3 = vpop.eup %3284  ;;  %1777 = vmatpush.msra.mxu2 %v1728_v25  ;;  %1870 = vmatpush.msrb.mxu1 %v1839_v54 }
 0x270   : > { %v1466_v4 = vmul.f32 %v3285_v3, %v3277_v55  ;;  %v1853_v3 = vld [vmem:[%s3538_s24 + $0x70] sm:$0xff] }
 0x271   : > { %1778 = vmatpush.msra.mxu2 %v1727_v30 }
 0x272   : > { %3100 = vmatmul.msk.f32.vlgmr.msra.gmra.mxu3 %vm1318_vm1, %v1466_v4  ;;  %3103 = vmatmul.msk.f32.vlgmr.msrb.gmra.mxu2 %vm983_vm0, %v3732_v29  ;;  %v1852_v4 = vld [vmem:[%s3538_s24 + $0x68] sm:$0xff] }
 0x273   : > { %1795 = vmatpush.msra.mxu3 %v1734_v18  ;;  %1887 = vmatpush.msrb.mxu2 %v1846_v33 }
 0x275   : > { %1796 = vmatpush.msra.mxu3 %v1733_v20  ;;  %1888 = vmatpush.msrb.mxu2 %v1845_v36 }
 0x276   : > { %3110 = vmatmul.msk.f32.vlgmr.msrb.gmra.mxu1 %vm983_vm0, %v3707_v13 }
 0x277   : > { %1797 = vmatpush.msra.mxu3 %v1732_v26  ;;  %1889 = vmatpush.msrb.mxu2 %v1844_v39 }
 0x279   : > { %1798 = vmatpush.msra.mxu3 %v1731_v31  ;;  %1890 = vmatpush.msrb.mxu2 %v1843_v44 }
 0x27a   : > { %3104 = vmatmul.msk.f32.vlgmr.msrb.gmra.mxu3 %vm983_vm0, %v3732_v29  ;;  %3107 = vmatmul.msk.f32.vlgmr.msra.gmra.mxu2 %vm983_vm0, %v3732_v29 }
 0x27b   : > { %1907 = vmatpush.msrb.mxu3 %v1850_v34 }
 0x27d   : > { %1908 = vmatpush.msrb.mxu3 %v1849_v37 }
 0x27f   : > { %1909 = vmatpush.msrb.mxu3 %v1848_v43 }
 0x281   : > { %1910 = vmatpush.msrb.mxu3 %v1847_v47 }
 0x282   : > { %3108 = vmatmul.msk.f32.vlgmr.msra.gmra.mxu3 %vm983_vm0, %v3732_v29  ;;  %3111 = vmatmul.msk.f32.vlgmr.msrb.gmra.mxu2 %vm983_vm0, %v3707_v13 }
 0x28a   : > { %3112 = vmatmul.msk.f32.vlgmr.msrb.gmra.mxu3 %vm983_vm0, %v3707_v13 }
 0x2db   : > { %v1510_v5 = vpop.f32.mrf.mxu1 }
 0x2dc   : > { %1560 = vrot.lane.b32.xlu2 %v1510_v5, %s3468_s1  ;;  %v1851_v5 = vld [vmem:[%s3538_s24 + $0x60] sm:$0xff]  ;;  %s4329_s1 = sld [smem:[#allocation14_spill]] }
 0x2e2   : > { %v3261_v12 = vld [vmem:[%s4329_s1 + $0x1] ss:$0 sm:$0xff]  ;;  %v3262_v14 = vld [vmem:[%s4329_s1 + $0x2] ss:$0 sm:$0xff]  ;;  %v3264_v21 = vld [vmem:[%s4329_s1] ss:$0 sm:$0xff] }
 0x2e3   : > { %v1487_v57 = vpop.f32.mrf.mxu0  ;;  %v1644_v15 = vpop.f32.mrf.mxu1  ;;  %v3267_v41 = vld [vmem:[%s4329_s1 + $0x3] ss:$0 sm:$0xff] }
 0x2eb   : > { %v1760_v25 = vpop.f32.mrf.mxu1 }
 0x2ec   : > { %v3910_v26 = vadd.f32 %v3264_v21, %v1760_v25 }
 0x2ed   : > { %v1533_v6 = vpop.f32.mrf.mxu2 }
 0x2ee   : > { %1564 = vrot.lane.b32.xlu0 %v1533_v6, %s3469_s11  ;;  %v3257_v6 = vld [vmem:[%s3558_s20 + $0x1] ss:$0 sm:$0xff]  ;;  %s4330_s11 = sld [smem:[#allocation13_spill]] }
 0x2f3   : > { %v1872_v33 = vpop.f32.mrf.mxu1 }
 0x2f4   : > { %v3265_v22 = vld [vmem:[%s4330_s11 + $0x1] ss:$0 sm:$0xff]  ;;  %v3266_v24 = vld [vmem:[%s4330_s11 + $0x2] ss:$0 sm:$0xff]  ;;  %v3268_v32 = vld [vmem:[%s4330_s11] ss:$0 sm:$0xff] }
 0x2f5   : > { %v1556_v7 = vpop.f32.mrf.mxu3  ;;  %v1664_v8 = vpop.f32.mrf.mxu2  ;;  %v1951_v34 = vadd.f32 %v3268_v32, %v1872_v33  ;;  %v3269_v44 = vld [vmem:[%s4330_s11 + $0x3] ss:$0 sm:$0xff] }
 0x2f6   : > { %1568 = vrot.lane.b32.xlu1 %v1556_v7, %s3470_s28  ;;  %v3258_v7 = vld [vmem:[%s3558_s20 + $0x2] ss:$0 sm:$0xff]  ;;  %v1720_v10 = vadd.f32 %v3257_v6, %v1664_v8  ;;  %s4331_s28 = sld [smem:[#allocation11_spill]] }
 0x2f8   : > { %3116 = vmatpush.xpose.msk.msra.mxu2 %vm1318_vm1, %v1720_v10 }
 0x2fc   : > { %3124 = vmatpush.xpose.msk.msrb.mxu2 %vm1318_vm1, %v1720_v10  ;;  %v3259_v35 = vld [vmem:[%s4331_s28] ss:$0 sm:$0xff]  ;;  %s4333_s28 = sld [smem:[#allocation16_spill]] }
 0x2fd   : > { %v1684_v9 = vpop.f32.mrf.mxu3  ;;  %v1780_v16 = vpop.f32.mrf.mxu2 }
 0x2fe   : > { %v1721_v11 = vadd.f32 %v3258_v7, %v1684_v9  ;;  %v3901_v18 = vadd.f32 %v3261_v12, %v1780_v16 }
 0x300   : > { %3118 = vmatpush.xpose.msk.msra.mxu3 %vm1318_vm1, %v1721_v11 }
 0x304   : > { %3126 = vmatpush.xpose.msk.msrb.mxu3 %vm1318_vm1, %v1721_v11 }
 0x305   : > { %v1800_v19 = vpop.f32.mrf.mxu3  ;;  %v1892_v27 = vpop.f32.mrf.mxu2 }
 0x306   : > { %v3903_v20 = vadd.f32 %v3262_v14, %v1800_v19  ;;  %v1952_v28 = vadd.f32 %v3265_v22, %v1892_v27 }
 0x308   : > { %3117 = vmatmul.msk.f32.vlgmr.msra.gmra.mxu2 %vm1318_vm1, %v1952_v28 }
 0x30d   : > { %v1912_v30 = vpop.f32.mrf.mxu3 }
 0x30e   : > { %v1953_v31 = vadd.f32 %v3266_v24, %v1912_v30 }
 0x310   : > { %3119 = vmatmul.msk.f32.vlgmr.msra.gmra.mxu3 %vm1318_vm1, %v1953_v31  ;;  %3125 = vmatmul.msk.f32.vlgmr.msrb.gmra.mxu2 %vm1318_vm1, %v1892_v27 }
 0x318   : > { %3127 = vmatmul.msk.f32.vlgmr.msrb.gmra.mxu3 %vm1318_vm1, %v1912_v30 }
 0x336   : > { %v1561_v55 = vpop.permute.xlu2 %1560 }
 0x337   : > { %v1571_v58 = vsel %vm1318_vm1, %v1487_v57, %v1561_v55  ;;  %v3947_v57 = vld [vmem:[%s4332_s3 + $0x8] sm:$0xff] }
 0x360   : > { %v1565_v56 = vpop.permute.xlu0 %1564 }
 0x361   : > { %v1573_v59 = vsel %vm1572_vm2, %v1571_v58, %v1565_v56  ;;  %v3944_v56 = vld [vmem:[%s4332_s3] sm:$0xff]  ;;  %v3950_v58 = vld [vmem:[%s4332_s3 + $0x10] sm:$0xff] }
 0x368   : > { %v1569_v60 = vpop.permute.xlu1 %1568 }
 0x369   : > { %v1575_v62 = vsel %vm1574_vm3, %v1573_v59, %v1569_v60  ;;  %v3953_v59 = vld [vmem:[%s4332_s3 + $0x18] sm:$0xff]  ;;  %v3956_v60 = vld [vmem:[%s4333_s28] sm:$0x1] }
 0x36a   : > { %3101 = vmatmul.msk.f32.vlgmr.msrb.gmra.mxu0 %vm983_vm0, %v1575_v62 }
 0x36b   : > { %1815 = vmatpush.msrb.mxu0 %v1738_v61 }
 0x36d   : > { %1816 = vmatpush.msrb.mxu0 %v1737_v63 }
 0x36f   : > { %1817 = vmatpush.msrb.mxu0 %v1736_v0 }
 0x371   : > { %1818 = vmatpush.msrb.mxu0 %v1735_v1 }
 0x372   : > { %3105 = vmatmul.msk.f32.vlgmr.msra.gmra.mxu0 %vm983_vm0, %v3732_v29 }
 0x373   : > { %1927 = vmatpush.msra.mxu0 %v1854_v2 }
 0x375   : > { %1928 = vmatpush.msra.mxu0 %v1853_v3 }
 0x377   : > { %1929 = vmatpush.msra.mxu0 %v1852_v4 }
 0x379   : > { %1930 = vmatpush.msra.mxu0 %v1851_v5 }
 0x37a   : > { %3109 = vmatmul.msk.f32.vlgmr.msrb.gmra.mxu0 %vm983_vm0, %v3732_v29  ;;  %v3260_v29 = vld [vmem:[%s3558_s20] ss:$0 sm:$0xff] }
 0x37b   : > { %v1719_v17 = vadd.f32 %v3260_v29, %v1644_v15 }
 0x37d   : > { %3114 = vmatpush.xpose.msk.msra.mxu1 %vm1318_vm1, %v1719_v17 }
 0x380   : > { %3115 = vmatmul.msk.f32.vlgmr.msra.gmra.mxu1 %vm1318_vm1, %v1951_v34 }
 0x381   : > { %3122 = vmatpush.xpose.msk.msrb.mxu1 %vm1318_vm1, %v1719_v17 }
 0x382   : > { %3113 = vmatmul.msk.f32.vlgmr.msra.gmra.mxu0 %vm983_vm0, %v3707_v13 }
 0x388   : > { %3123 = vmatmul.msk.f32.vlgmr.msrb.gmra.mxu1 %vm1318_vm1, %v1872_v33 }
 0x38b   : > { %v2004_v47 = vpop.f32.mrf.mxu2 }
 0x38c   : > { %2156 = vst.msk [vmem:[#allocation3 + $0x8] sm:$0xff] %vm1318_vm1, %v2004_v47 }
 0x393   : > { %v2030_v49 = vpop.f32.mrf.mxu3  ;;  %v2102_v50 = vpop.f32.mrf.mxu2 }
 0x394   : > { %2157 = vst.msk [vmem:[#allocation3 + $0x10] sm:$0xff] %vm1318_vm1, %v2030_v49  ;;  %v3935_v52 = vsub.f32 %v2102_v50, %v3794_v23 }
 0x39b   : > { %v2125_v53 = vpop.f32.mrf.mxu3 }
 0x39c   : > { %v3941_v55 = vsub.f32 %v2125_v53, %v3794_v23 }
 0x3e7   : > { %v1604_v36 = vpop.f32.mrf.mxu0 }
 0x3e8   : > { %v3920_v37 = vadd.f32 %v3259_v35, %v1604_v36 }
 0x3ef   : > { %v1704_v39 = vpop.f32.mrf.mxu0 }
 0x3f0   : > { %v1722_v40 = vadd.f32 %v3263_v38, %v1704_v39 }
 0x3f2   : > { %3120 = vmatpush.xpose.msk.msrb.mxu0 %vm1318_vm1, %v1722_v40 }
 0x3f6   : > { %3128 = vmatpush.xpose.msk.msra.mxu0 %vm1318_vm1, %v1722_v40 }
 0x3f7   : > { %v1820_v42 = vpop.f32.mrf.mxu0 }
 0x3f8   : > { %v3926_v43 = vadd.f32 %v3267_v41, %v1820_v42 }
 0x3fd   : > { %v1978_v48 = vpop.f32.mrf.mxu1 }
 0x3fe   : > { %2155 = vst.msk [vmem:[#allocation3] sm:$0xff] %vm1318_vm1, %v1978_v48 }
 0x3ff   : > { %v1932_v45 = vpop.f32.mrf.mxu0 }
 0x400   : > { %v1954_v46 = vadd.f32 %v3269_v44, %v1932_v45 }
 0x402   : > { %3121 = vmatmul.msk.f32.vlgmr.msrb.gmra.mxu0 %vm1318_vm1, %v1954_v46 }
 0x405   : > { %v2079_v51 = vpop.f32.mrf.mxu1 }
 0x406   : > { %v3938_v54 = vsub.f32 %v2079_v51, %v3794_v23 }
 0x40a   : > { %3129 = vmatmul.msk.f32.vlgmr.msra.gmra.mxu0 %vm1318_vm1, %v1932_v45 }
 0x47f   : > { %v2056_v61 = vpop.f32.mrf.mxu0 }
 0x480   : > { %2158 = vst.msk [vmem:[#allocation3 + $0x18] sm:$0xff] %vm1318_vm1, %v2056_v61 }
 0x487   : > { %v2148_v62 = vpop.f32.mrf.mxu0 }
 0x488   : > { %v3960_v63 = vsub.f32 %v2148_v62, %v3794_v23 }
 0x489 LB: >> { %3158 = vmatpush.msra.mxu1 %v3910_v26  ;;  %3159 = vmatpush.msra.mxu2 %v3910_v26  ;;  %s4296_s28 = sshll.u32 %s3436_s5, 2  ;;  %s3473_s3 = smov 24   ;;  %vm2716_vm4 = vcmask 1041409   ;;  %vm2718_vm5 = vcmask 1042434   ;;  %vm2720_vm6 = vcmask 1043459   ;;  %vm2724_vm7 = vcmask 257024   ;;  %s3436_s5 = sphi %s3963_s5, %s2169_s5  }
 0x48a   : >> { %3160 = vmatpush.msra.mxu3 %v3910_v26  ;;  %2443 = vmatpush.msra.mxu0 %v3910_v26  ;;  %s2171_s1 = scalar_lea.vmem [#allocation3], %s4296_s28  ;;  %s3472_s28 = smov 16  }
 0x48b   : >> { %2484 = vmatpush.msrb.mxu1 %v3901_v18  ;;  %2525 = vmatpush.msrb.mxu2 %v3903_v20  ;;  %v3978_v23 = vld [vmem:[%s2171_s1 + $0x18] sm:$0xf]  ;;  %v3980_v0 = vld [vmem:[%s2171_s1] sm:$0xf]  ;;  %v2173_v1 = vld [vmem:[%s2171_s1 + $0x8] sm:$0xf] }
 0x48c   : >> { %2566 = vmatpush.msrb.mxu3 %v3926_v43  ;;  %2667 = vmatpush.msrb.mxu0 %v3953_v59  ;;  %v2204_v2 = vperm.slane %v3978_v23, 0  ;;  %v2181_v3 = vrot.slane %v3980_v0, 2  ;;  %v2180_v4 = vrot.slane %v3980_v0, 1  ;;  %v2174_v5 = vld [vmem:[%s2171_s1 + $0x10] sm:$0xf]  ;;  %v2182_v6 = vrot.slane %v3980_v0, 3 }
 0x48d   : >> { %v2196_v10 = vperm.slane %v2173_v1, 0  ;;  %v2200_v11 = vperm.slane %v2174_v5, 0  ;;  %v2183_v21 = vrot.slane %v2173_v1, 1  ;;  %v2186_v25 = vrot.slane %v2174_v5, 1  ;;  %s3471_s1 = smov 8  }
 0x48e   : >> { %2668 = vmatpush.msrb.mxu0 %v3950_v58  ;;  %v3989_v7 = vsub.f32 %v2204_v2, %v3960_v63  ;;  %v2194_v8 = vperm.slane %v2181_v3, 0  ;;  %v2193_v9 = vperm.slane %v2180_v4, 0  ;;  %v2195_v15 = vperm.slane %v2182_v6, 0 }
 0x48f   : >> { %v4006_v19 = vsub.f32 %v2196_v10, %v3935_v52  ;;  %v4012_v24 = vsub.f32 %v2200_v11, %v3941_v55  ;;  %v2189_v27 = vrot.slane %v3978_v23, 1  ;;  %v2197_v30 = vperm.slane %v2183_v21, 0 }
 0x490   : >> { %2669 = vmatpush.msrb.mxu0 %v3947_v57  ;;  %v2276_v29 = vsel %vm1318_vm1, %v3989_v7, -inf  ;;  %v3995_v12 = vsub.f32 %v2194_v8, %v3938_v54  ;;  %v3998_v14 = vsub.f32 %v2193_v9, %v3938_v54  ;;  %v4009_v22 = vsub.f32 %v2195_v15, %v3938_v54 }
 0x491   : >> { %2277 = vmax.xlane.f32.xlu2 %v2276_v29  ;;  %v2252_v28 = vsel %vm1318_vm1, %v4006_v19, -inf  ;;  %v2264_v32 = vsel %vm1318_vm1, %v4012_v24, -inf  ;;  %v2201_v33 = vperm.slane %v2186_v25, 0  ;;  %v2205_v34 = vperm.slane %v2189_v27, 0 }
 0x492   : >> { %2670 = vmatpush.msrb.mxu0 %v3944_v56  ;;  %v2246_v16 = vsel %vm1318_vm1, %v3995_v12, -inf  ;;  %v2243_v17 = vsel %vm1318_vm1, %v3998_v14, -inf  ;;  %v2249_v31 = vsel %vm1318_vm1, %v4009_v22, -inf  ;;  %v4022_v35 = vsub.f32 %v2197_v30, %v3935_v52 }
 0x493   : >> { %2247 = vmax.xlane.f32.xlu0 %v2246_v16  ;;  %2244 = vmax.xlane.f32.xlu1 %v2243_v17  ;;  %v2184_v36 = vrot.slane %v2173_v1, 2  ;;  %v4025_v38 = vsub.f32 %v2201_v33, %v3941_v55  ;;  %v2187_v39 = vrot.slane %v2174_v5, 2  ;;  %v4028_v40 = vsub.f32 %v2205_v34, %v3960_v63 }
 0x494   : >> { %v2190_v41 = vrot.slane %v3978_v23, 2  ;;  %v2255_v42 = vsel %vm1318_vm1, %v4022_v35, -inf  ;;  %v2185_v50 = vrot.slane %v2173_v1, 3  ;;  %v2188_v53 = vrot.slane %v2174_v5, 3 }
 0x495   : >> { %v2198_v44 = vperm.slane %v2184_v36, 0  ;;  %v2267_v45 = vsel %vm1318_vm1, %v4025_v38, -inf  ;;  %v2202_v46 = vperm.slane %v2187_v39, 0  ;;  %v2279_v47 = vsel %vm1318_vm1, %v4028_v40, -inf }
 0x496   : >> { %v2206_v48 = vperm.slane %v2190_v41, 0  ;;  %v2191_v62 = vrot.slane %v3978_v23, 3  ;;  %v2199_v3 = vperm.slane %v2185_v50, 0  ;;  %v2203_v6 = vperm.slane %v2188_v53, 0 }
 0x497   : >> { %v4038_v49 = vsub.f32 %v2198_v44, %v3935_v52  ;;  %v4041_v51 = vsub.f32 %v2202_v46, %v3941_v55  ;;  %v2192_v29 = vperm.slane %v3980_v0, 0 }
 0x498   : >> { %v4044_v61 = vsub.f32 %v2206_v48, %v3960_v63  ;;  %v2207_v8 = vperm.slane %v2191_v62, 0  ;;  %v4054_v5 = vsub.f32 %v2199_v3, %v3935_v52  ;;  %v4057_v23 = vsub.f32 %v2203_v6, %v3941_v55 }
 0x499   : >> { %2253 = vmax.xlane.f32.xlu2 %v2252_v28  ;;  %v2258_v2 = vsel %vm1318_vm1, %v4038_v49, -inf  ;;  %v2270_v4 = vsel %vm1318_vm1, %v4041_v51, -inf  ;;  %v4070_v16 = vsub.f32 %v2192_v29, %v3938_v54 }
 0x49a   : >> { %v2282_v1 = vsel %vm1318_vm1, %v4044_v61, -inf  ;;  %v4060_v9 = vsub.f32 %v2207_v8, %v3960_v63  ;;  %v2261_v10 = vsel %vm1318_vm1, %v4054_v5, -inf  ;;  %v2273_v11 = vsel %vm1318_vm1, %v4057_v23, -inf }
 0x49b   : >> { %2250 = vmax.xlane.f32.xlu0 %v2249_v31  ;;  %2265 = vmax.xlane.f32.xlu1 %v2264_v32  ;;  %v2240_v17 = vsel %vm1318_vm1, %v4070_v16, -inf }
 0x49c   : >> { %v2285_v15 = vsel %vm1318_vm1, %v4060_v9, -inf }
 0x4a1   : >> { %2256 = vmax.xlane.f32.xlu2 %v2255_v42 }
 0x4a3   : >> { %2268 = vmax.xlane.f32.xlu0 %v2267_v45  ;;  %2280 = vmax.xlane.f32.xlu1 %v2279_v47 }
 0x4a9   : >> { %2259 = vmax.xlane.f32.xlu2 %v2258_v2 }
 0x4ab   : >> { %2271 = vmax.xlane.f32.xlu0 %v2270_v4  ;;  %2283 = vmax.xlane.f32.xlu1 %v2282_v1 }
 0x4b1   : >> { %2262 = vmax.xlane.f32.xlu2 %v2261_v10 }
 0x4b3   : >> { %2274 = vmax.xlane.f32.xlu0 %v2273_v11  ;;  %2286 = vmax.xlane.f32.xlu1 %v2285_v15 }
 0x4bb   : >> { %2241 = vmax.xlane.f32.xlu0 %v2240_v17 }
 0x504   : >> { %v2278_v21 = vpop.xlane.xlu2 %2277 }
 0x505   : >> { %v2300_v44 = vsub.f32 %v3989_v7, %v2278_v21 }
 0x506   : >> { %v2248_v25 = vpop.xlane.xlu0 %2247  ;;  %v2245_v27 = vpop.xlane.xlu1 %2244 }
 0x507   : >> { %v2290_v28 = vsub.f32 %v3995_v12, %v2248_v25  ;;  %v2289_v0 = vsub.f32 %v3998_v14, %v2245_v27 }
 0x509   : >> { %v2308_v30 = vmul.f32 1.442695, %v2290_v28  ;;  %v2306_v31 = vmul.f32 1.442695, %v2289_v0 }
 0x50b   : >> { %3286 = vpow2.f32 %v2308_v30 }
 0x50c   : >> { %3288 = vpow2.f32 %v2306_v31  ;;  %v2254_v32 = vpop.xlane.xlu2 %2253 }
 0x50d   : >> { %v2292_v33 = vsub.f32 %v4006_v19, %v2254_v32 }
 0x50e   : >> { %v2251_v34 = vpop.xlane.xlu0 %2250  ;;  %v2266_v36 = vpop.xlane.xlu1 %2265 }
 0x50f   : >> { %v2312_v39 = vmul.f32 1.442695, %v2292_v33  ;;  %v2291_v41 = vsub.f32 %v4009_v22, %v2251_v34  ;;  %v2296_v42 = vsub.f32 %v4012_v24, %v2266_v36  ;;  %v2328_v22 = vmul.f32 1.442695, %v2300_v44 }
 0x511   : >> { %v4080_v45 = vpop.eup %3286  ;;  %3290 = vpow2.f32 %v2312_v39  ;;  %v2310_v12 = vmul.f32 1.442695, %v2291_v41  ;;  %v2320_v14 = vmul.f32 1.442695, %v2296_v42 }
 0x512   : >> { %v4082_v46 = vpop.eup %3288  ;;  %v2342_v47 = vsel %vm1318_vm1, %v4080_v45, 0.0 }
 0x513   : >> { %3292 = vpow2.f32 %v2310_v12  ;;  %2343 = vadd.xlane.f32.xlu1 %v2342_v47  ;;  %v2339_v19 = vsel %vm1318_vm1, %v4082_v46, 0.0 }
 0x514   : >> { %3294 = vpow2.f32 %v2320_v14  ;;  %2340 = vadd.xlane.f32.xlu0 %v2339_v19  ;;  %v2257_v24 = vpop.xlane.xlu2 %2256 }
 0x515   : >> { %v2293_v7 = vsub.f32 %v4022_v35, %v2257_v24  ;;  %3296 = vpow2.f32 %v2328_v22 }
 0x516   : >> { %v2269_v48 = vpop.xlane.xlu0 %2268  ;;  %v2281_v50 = vpop.xlane.xlu1 %2280 }
 0x517   : >> { %v4089_v53 = vpop.eup %3290  ;;  %v2314_v62 = vmul.f32 1.442695, %v2293_v7  ;;  %v2297_v2 = vsub.f32 %v4025_v38, %v2269_v48  ;;  %v2301_v3 = vsub.f32 %v4028_v40, %v2281_v50 }
 0x518   : >> { %v2348_v1 = vsel %vm1318_vm1, %v4089_v53, 0.0 }
 0x519   : >> { %v4093_v4 = vpop.eup %3292  ;;  %3298 = vpow2.f32 %v2314_v62  ;;  %v2322_v6 = vmul.f32 1.442695, %v2297_v2  ;;  %v2330_v10 = vmul.f32 1.442695, %v2301_v3 }
 0x51a   : >> { %v4097_v8 = vpop.eup %3294  ;;  %v2345_v35 = vsel %vm1318_vm1, %v4093_v4, 0.0 }
 0x51b   : >> { %3300 = vpow2.f32 %v2322_v6  ;;  %2346 = vadd.xlane.f32.xlu2 %v2345_v35  ;;  %v2360_v38 = vsel %vm1318_vm1, %v4097_v8, 0.0  ;;  %v4104_v29 = vpop.eup %3296 }
 0x51c   : >> { %2349 = vadd.xlane.f32.xlu0 %v2348_v1  ;;  %2361 = vadd.xlane.f32.xlu1 %v2360_v38  ;;  %v2260_v40 = vpop.xlane.xlu2 %2259  ;;  %3302 = vpow2.f32 %v2330_v10 }
 0x51d   : >> { %v2294_v11 = vsub.f32 %v4038_v49, %v2260_v40  ;;  %v2372_v49 = vsel %vm1318_vm1, %v4104_v29, 0.0 }
 0x51e   : >> { %v2272_v15 = vpop.xlane.xlu0 %2271  ;;  %v2284_v17 = vpop.xlane.xlu1 %2283 }
 0x51f   : >> { %v4106_v21 = vpop.eup %3298  ;;  %v2316_v25 = vmul.f32 1.442695, %v2294_v11  ;;  %v2298_v27 = vsub.f32 %v4041_v51, %v2272_v15  ;;  %v2302_v28 = vsub.f32 %v4044_v61, %v2284_v17 }
 0x520   : >> { %v2351_v31 = vsel %vm1318_vm1, %v4106_v21, 0.0 }
 0x521   : >> { %v4110_v0 = vpop.eup %3300  ;;  %3304 = vpow2.f32 %v2316_v25  ;;  %v2324_v30 = vmul.f32 1.442695, %v2298_v27  ;;  %v2332_v33 = vmul.f32 1.442695, %v2302_v28 }
 0x522   : >> { %v2363_v32 = vsel %vm1318_vm1, %v4110_v0, 0.0  ;;  %v4118_v61 = vpop.eup %3302 }
 0x523   : >> { %3306 = vpow2.f32 %v2324_v30  ;;  %2373 = vadd.xlane.f32.xlu2 %v2372_v49  ;;  %v2375_v14 = vsel %vm1318_vm1, %v4118_v61, 0.0 }
 0x524   : >> { %2352 = vadd.xlane.f32.xlu0 %v2351_v31  ;;  %2364 = vadd.xlane.f32.xlu1 %v2363_v32  ;;  %v2263_v51 = vpop.xlane.xlu2 %2262  ;;  %3308 = vpow2.f32 %v2332_v33 }
 0x525   : >> { %v2295_v34 = vsub.f32 %v4054_v5, %v2263_v51 }
 0x526   : >> { %v2275_v36 = vpop.xlane.xlu0 %2274  ;;  %v2287_v39 = vpop.xlane.xlu1 %2286 }
 0x527   : >> { %v4121_v41 = vpop.eup %3304  ;;  %v2318_v42 = vmul.f32 1.442695, %v2295_v34  ;;  %v2299_v44 = vsub.f32 %v4057_v23, %v2275_v36  ;;  %v2303_v12 = vsub.f32 %v4060_v9, %v2287_v39 }
 0x528   : >> { %v2354_v5 = vsel %vm1318_vm1, %v4121_v41, 0.0 }
 0x529   : >> { %v4127_v47 = vpop.eup %3306  ;;  %3310 = vpow2.f32 %v2318_v42  ;;  %v2326_v19 = vmul.f32 1.442695, %v2299_v44  ;;  %v2334_v24 = vmul.f32 1.442695, %v2303_v12 }
 0x52a   : >> { %v2366_v22 = vsel %vm1318_vm1, %v4127_v47, 0.0  ;;  %v4133_v23 = vpop.eup %3308 }
 0x52b   : >> { %3312 = vpow2.f32 %v2326_v19  ;;  %2376 = vadd.xlane.f32.xlu2 %v2375_v14  ;;  %v2378_v50 = vsel %vm1318_vm1, %v4133_v23, 0.0 }
 0x52c   : >> { %2355 = vadd.xlane.f32.xlu0 %v2354_v5  ;;  %2367 = vadd.xlane.f32.xlu1 %v2366_v22  ;;  %3314 = vpow2.f32 %v2334_v24 }
 0x52e   : >> { %v2242_v9 = vpop.xlane.xlu0 %2241 }
 0x52f   : >> { %v4135_v7 = vpop.eup %3310  ;;  %v2288_v48 = vsub.f32 %v4070_v16, %v2242_v9 }
 0x530   : >> { %v2357_v3 = vsel %vm1318_vm1, %v4135_v7, 0.0 }
 0x531   : >> { %v4140_v62 = vpop.eup %3312  ;;  %v2304_v2 = vmul.f32 1.442695, %v2288_v48 }
 0x532   : >> { %v2369_v6 = vsel %vm1318_vm1, %v4140_v62, 0.0  ;;  %v4146_v1 = vpop.eup %3314 }
 0x533   : >> { %3316 = vpow2.f32 %v2304_v2  ;;  %2379 = vadd.xlane.f32.xlu2 %v2378_v50  ;;  %v2381_v16 = vsel %vm1318_vm1, %v4146_v1, 0.0 }
 0x534   : >> { %2358 = vadd.xlane.f32.xlu0 %v2357_v3  ;;  %2370 = vadd.xlane.f32.xlu1 %v2369_v6 }
 0x539   : >> { %v4150_v35 = vpop.eup %3316 }
 0x53a   : >> { %v2336_v38 = vsel %vm1318_vm1, %v4150_v35, 0.0 }
 0x53b   : >> { %2382 = vadd.xlane.f32.xlu2 %v2381_v16 }
 0x53c   : >> { %2337 = vadd.xlane.f32.xlu1 %v2336_v38 }
 0x586   : >> { %v2344_v10 = vpop.xlane.xlu1 %2343 }
 0x587   : >> { %v2341_v40 = vpop.xlane.xlu0 %2340  ;;  %3318 = vrcp.f32 %v2344_v10 }
 0x588   : >> { %3320 = vrcp.f32 %v2341_v40 }
 0x58d   : >> { %v3319_v11 = vpop.eup %3318 }
 0x58e   : >> { %v3321_v15 = vpop.eup %3320  ;;  %v2347_v17 = vpop.xlane.xlu2 %2346  ;;  %v2402_v25 = vmul.f32 %v3319_v11, %v4080_v45 }
 0x58f   : >> { %3322 = vrcp.f32 %v2347_v17  ;;  %v2350_v27 = vpop.xlane.xlu0 %2349  ;;  %v2362_v28 = vpop.xlane.xlu1 %2361  ;;  %v2401_v30 = vmul.f32 %v3321_v15, %v4082_v46 }
 0x590   : >> { %3324 = vrcp.f32 %v2350_v27  ;;  %3133 = vmatmul.msk.f32.vlgmr.msra.gmra.mxu2 %vm1318_vm1, %v2402_v25 }
 0x591   : >> { %3326 = vrcp.f32 %v2362_v28  ;;  %3132 = vmatmul.msk.f32.vlgmr.msra.gmra.mxu1 %vm1318_vm1, %v2401_v30 }
 0x595   : >> { %v3323_v31 = vpop.eup %3322 }
 0x596   : >> { %v3325_v49 = vpop.eup %3324  ;;  %v2374_v32 = vpop.xlane.xlu2 %2373  ;;  %v2403_v33 = vmul.f32 %v3323_v31, %v4093_v4 }
 0x597   : >> { %v3327_v51 = vpop.eup %3326  ;;  %3328 = vrcp.f32 %v2374_v32  ;;  %v2353_v34 = vpop.xlane.xlu0 %2352  ;;  %v2404_v36 = vmul.f32 %v3325_v49, %v4089_v53 }
 0x598   : >> { %v2365_v45 = vpop.xlane.xlu1 %2364  ;;  %3330 = vrcp.f32 %v2353_v34  ;;  %3134 = vmatmul.msk.f32.vlgmr.msra.gmra.mxu3 %vm1318_vm1, %v2403_v33  ;;  %v2408_v46 = vmul.f32 %v3327_v51, %v4097_v8 }
 0x599   : >> { %3332 = vrcp.f32 %v2365_v45  ;;  %3135 = vmatmul.msk.f32.vlgmr.msrb.gmra.mxu1 %vm1318_vm1, %v2404_v36 }
 0x59a   : >> { %3139 = vmatmul.msk.f32.vlgmr.msrb.gmra.mxu2 %vm1318_vm1, %v2408_v46 }
 0x59d   : >> { %v3329_v39 = vpop.eup %3328 }
 0x59e   : >> { %v3331_v42 = vpop.eup %3330  ;;  %v2377_v44 = vpop.xlane.xlu2 %2376  ;;  %v2412_v4 = vmul.f32 %v3329_v39, %v4104_v29 }
 0x59f   : >> { %v3333_v12 = vpop.eup %3332  ;;  %v2356_v14 = vpop.xlane.xlu0 %2355  ;;  %3334 = vrcp.f32 %v2377_v44  ;;  %v2405_v53 = vmul.f32 %v3331_v42, %v4106_v21 }
 0x5a0   : >> { %v2368_v19 = vpop.xlane.xlu1 %2367  ;;  %3336 = vrcp.f32 %v2356_v14  ;;  %v2409_v5 = vmul.f32 %v3333_v12, %v4110_v0  ;;  %3143 = vmatmul.msk.f32.vlgmr.msrb.gmra.mxu3 %vm1318_vm1, %v2412_v4 }
 0x5a1   : >> { %3338 = vrcp.f32 %v2368_v19  ;;  %3136 = vmatmul.msk.f32.gmra.mxu1 %vm1318_vm1, %v2405_v53 }
 0x5a2   : >> { %3140 = vmatmul.msk.f32.gmra.mxu2 %vm1318_vm1, %v2409_v5 }
 0x5a5   : >> { %v3335_v8 = vpop.eup %3334 }
 0x5a6   : >> { %v3337_v22 = vpop.eup %3336  ;;  %v2380_v24 = vpop.xlane.xlu2 %2379  ;;  %v2413_v29 = vmul.f32 %v3335_v8, %v4118_v61 }
 0x5a7   : >> { %v3339_v9 = vpop.eup %3338  ;;  %v2359_v48 = vpop.xlane.xlu0 %2358  ;;  %3340 = vrcp.f32 %v2380_v24  ;;  %v2406_v21 = vmul.f32 %v3337_v22, %v4121_v41 }
 0x5a8   : >> { %v2371_v50 = vpop.xlane.xlu1 %2370  ;;  %3342 = vrcp.f32 %v2359_v48  ;;  %v2410_v0 = vmul.f32 %v3339_v9, %v4127_v47  ;;  %3144 = vmatmul.msk.f32.gmra.mxu3 %vm1318_vm1, %v2413_v29 }
 0x5a9   : >> { %3344 = vrcp.f32 %v2371_v50  ;;  %3137 = vmatmul.msk.f32.gmra.mxu1 %vm1318_vm1, %v2406_v21 }
 0x5aa   : >> { %3141 = vmatmul.msk.f32.gmra.mxu2 %vm1318_vm1, %v2410_v0 }
 0x5ad   : >> { %v3341_v2 = vpop.eup %3340 }
 0x5ae   : >> { %v3343_v3 = vpop.eup %3342  ;;  %v2383_v6 = vpop.xlane.xlu2 %2382  ;;  %v2414_v61 = vmul.f32 %v3341_v2, %v4133_v23 }
 0x5af   : >> { %v3345_v16 = vpop.eup %3344  ;;  %3346 = vrcp.f32 %v2383_v6  ;;  %v2407_v41 = vmul.f32 %v3343_v3, %v4135_v7 }
 0x5b0   : >> { %v2338_v38 = vpop.xlane.xlu1 %2337  ;;  %v2411_v47 = vmul.f32 %v3345_v16, %v4140_v62  ;;  %3145 = vmatmul.msk.f32.gmra.mxu3 %vm1318_vm1, %v2414_v61  ;;  %v2641_v16 = vperm.slane %v3956_v60, 0 }
 0x5b1   : >> { %3348 = vrcp.f32 %v2338_v38  ;;  %3138 = vmatmul.msk.f32.gmra.mxu1 %vm1318_vm1, %v2407_v41 }
 0x5b2   : >> { %3142 = vmatmul.msk.f32.gmra.mxu2 %vm1318_vm1, %v2411_v47 }
 0x5b5   : >> { %v3347_v10 = vpop.eup %3346 }
 0x5b6   : >> { %v2415_v11 = vmul.f32 %v3347_v10, %v4146_v1 }
 0x5b7   : >> { %v3349_v40 = vpop.eup %3348 }
 0x5b8   : >> { %v2400_v23 = vmul.f32 %v3349_v40, %v4150_v35  ;;  %3146 = vmatmul.msk.f32.gmra.mxu3 %vm1318_vm1, %v2415_v11 }
 0x5ba   : >> { %3131 = vmatmul.msk.f32.vlgmr.msra.gmra.mxu0 %vm1318_vm1, %v2400_v23 }
 0x60e   : >> { %v2448_v7 = vpop.f32.mrf.mxu1 }
 0x613   : >> { %v2451_v15 = vpop.f32.mrf.mxu2 }
 0x616   : >> { %v2486_v17 = vpop.f32.mrf.mxu1 }
 0x617   : >> { %2584 = vrot.lane.b32.xlu2 %v2486_v17, %s3471_s1 }
 0x61b   : >> { %v2454_v62 = vpop.f32.mrf.mxu3 }
 0x61d   : >> { %v2527_v25 = vpop.f32.mrf.mxu2 }
 0x61e   : >> { %2600 = vrot.lane.b32.xlu0 %v2527_v25, %s3472_s28  ;;  %v2489_v27 = vpop.f32.mrf.mxu1 }
 0x61f   : >> { %2586 = vrot.lane.b32.xlu2 %v2489_v27, %s3471_s1 }
 0x623   : >> { %v2568_v28 = vpop.f32.mrf.mxu3 }
 0x624   : >> { %2616 = vrot.lane.b32.xlu1 %v2568_v28, %s3473_s3 }
 0x625   : >> { %v2530_v1 = vpop.f32.mrf.mxu2 }
 0x626   : >> { %2602 = vrot.lane.b32.xlu0 %v2530_v1, %s3472_s28  ;;  %v2492_v35 = vpop.f32.mrf.mxu1 }
 0x62b   : >> { %v2571_v30 = vpop.f32.mrf.mxu3 }
 0x62c   : >> { %2588 = vrot.lane.b32.xlu1 %v2492_v35, %s3471_s1  ;;  %2618 = vrot.lane.b32.xlu2 %v2571_v30, %s3473_s3 }
 0x62d   : >> { %v2533_v31 = vpop.f32.mrf.mxu2 }
 0x62e   : >> { %2604 = vrot.lane.b32.xlu0 %v2533_v31, %s3472_s28  ;;  %v2495_v49 = vpop.f32.mrf.mxu1 }
 0x633   : >> { %v2574_v32 = vpop.f32.mrf.mxu3 }
 0x634   : >> { %2590 = vrot.lane.b32.xlu1 %v2495_v49, %s3471_s1  ;;  %2620 = vrot.lane.b32.xlu2 %v2574_v32, %s3473_s3 }
 0x635   : >> { %v2536_v33 = vpop.f32.mrf.mxu2 }
 0x636   : >> { %2606 = vrot.lane.b32.xlu0 %v2536_v33, %s3472_s28 }
 0x637   : >> { %v2445_v46 = vpop.f32.mrf.mxu0 }
 0x63b   : >> { %v2577_v51 = vpop.f32.mrf.mxu3 }
 0x63c   : >> { %2622 = vrot.lane.b32.xlu2 %v2577_v51, %s3473_s3  ;;  %s4334_s3 = sshll.u32 %s3436_s5, 2  ;;  %s2169_s5 = sadd.s32 1, %s3436_s5  }
 0x63d   : >> { %s2723_s28 = scalar_lea.vmem [#allocation2], %s4334_s3  ;;  %p2166_p11 = scmp.ge.s32.totalorder %s2169_s5, 2  }
 0x63e   : > { %s4335_s5 = sld [smem:[#allocation24_spill]] (%p2166_p11)  ;;  %vm2868_vm15 = vcmask (%p2166_p11), 523264   ;;  %s4346_s9 = sand.u32 (%p2166_p11), 1, %s3424_s16  }
 0x63f   : > { %s4336_s1 = sld [smem:[#allocation23_spill]] (%p2166_p11)  ;;  %s2932_s11 = scalar_lea.sflag (%p2166_p11), [#allocation5], %s4346_s9 }
 0x640   : > { %s4337_s3 = sld [smem:[#allocation17_spill]] (%p2166_p11) }
 0x641   : > { %s4341_s4 = sld [smem:[#allocation25_spill]] (%p2166_p11) }
 0x644   : > { %v2807_v58 = vld [vmem:[%s4335_s5 + $0x18] sm:$0xff] (%p2166_p11)  ;;  %v2806_v59 = vld [vmem:[%s4335_s5 + $0x10] sm:$0xff] (%p2166_p11)  ;;  %v2805_v60 = vld [vmem:[%s4335_s5 + $0x8] sm:$0xff] (%p2166_p11) }
 0x645   : > { %2823 = vmatpush.msra.mxu0 (%p2166_p11), %v2807_v58  ;;  %v2804_v63 = vld [vmem:[%s4335_s5] sm:$0xff] (%p2166_p11)  ;;  %s4340_s5 = sld [smem:[#allocation20_spill]] (%p2166_p11) }
 0x647   : > { %2824 = vmatpush.msra.mxu0 (%p2166_p11), %v2806_v59 }
 0x649   : > { %2825 = vmatpush.msra.mxu0 (%p2166_p11), %v2805_v60 }
 0x64b   : > { %2826 = vmatpush.msra.mxu0 (%p2166_p11), %v2804_v63 }
 0x671   : >> { %v2585_v34 = vpop.permute.xlu2 %2584 }
 0x672   : >> { %v2628_v39 = vsel %vm1318_vm1, %v2445_v46, %v2585_v34 }
 0x679   : >> { %v2587_v36 = vpop.permute.xlu2 %2586 }
 0x67a   : >> { %v2629_v19 = vsel %vm1318_vm1, %v2448_v7, %v2587_v36 }
 0x686   : >> { %v2619_v14 = vpop.permute.xlu2 %2618 }
 0x68e   : >> { %v2621_v29 = vpop.permute.xlu2 %2620 }
 0x690   : >> { %v2601_v45 = vpop.permute.xlu0 %2600 }
 0x691   : >> { %v2632_v42 = vsel %vm1572_vm2, %v2628_v39, %v2601_v45 }
 0x696   : >> { %v2617_v44 = vpop.permute.xlu1 %2616  ;;  %v2623_v3 = vpop.permute.xlu2 %2622 }
 0x697   : >> { %v2636_v4 = vsel %vm1574_vm3, %v2632_v42, %v2617_v44 }
 0x698   : >> { %v2603_v12 = vpop.permute.xlu0 %2602  ;;  %3147 = vmatmul.msk.f32.vlgmr.msrb.gmra.mxu0 %vm983_vm0, %v2636_v4 }
 0x699   : >> { %v2633_v53 = vsel %vm1572_vm2, %v2629_v19, %v2603_v12 }
 0x69a   : >> { %v2637_v8 = vsel %vm1574_vm3, %v2633_v53, %v2619_v14 }
 0x69e   : >> { %v2589_v5 = vpop.permute.xlu1 %2588 }
 0x69f   : >> { %v2630_v24 = vsel %vm1318_vm1, %v2451_v15, %v2589_v5 }
 0x6a0   : >> { %v2605_v22 = vpop.permute.xlu0 %2604  ;;  %3148 = vmatmul.msk.f32.gmra.mxu0 %vm983_vm0, %v2637_v8 }
 0x6a1   : >> { %v2634_v9 = vsel %vm1572_vm2, %v2630_v24, %v2605_v22 }
 0x6a2   : >> { %v2638_v50 = vsel %vm1574_vm3, %v2634_v9, %v2621_v29 }
 0x6a6   : >> { %v2591_v48 = vpop.permute.xlu1 %2590 }
 0x6a7   : >> { %v2631_v0 = vsel %vm1318_vm1, %v2454_v62, %v2591_v48 }
 0x6a8   : >> { %3149 = vmatmul.msk.f32.gmra.mxu0 %vm983_vm0, %v2638_v50  ;;  %v2607_v21 = vpop.permute.xlu0 %2606  ;;  %v2767_v50 = vadd.f32 (%p2166_p11), %v3920_v37, %v3707_v13 }
 0x6a9   : >> { %v2635_v2 = vsel %vm1572_vm2, %v2631_v0, %v2607_v21  ;;  %v3474_v0 = vmov (%p2166_p11), 32.0  }
 0x6aa   : >> { %v2639_v6 = vsel %vm1574_vm3, %v2635_v2, %v2623_v3  ;;  %v2770_v21 = vsel (%p2166_p11), %vm983_vm0, %v2767_v50, 0.0  ;;  %3358 = vrcp.f32 (%p2166_p11), %v3474_v0 }
 0x6b0   : >> { %3150 = vmatmul.msk.f32.gmra.mxu0 %vm983_vm0, %v2639_v6  ;;  %v3359_v2 = vpop.eup (%p2166_p11), %3358 }
 0x6b1   : > { %v2734_v3 = vmul.f32 (%p2166_p11), 32.0, %v3359_v2  ;;  %vm2738_vm8 = vweird.f32 (%p2166_p11), %v3359_v2 }
 0x6b3   : > { %v2735_v6 = vsub.f32 (%p2166_p11), 1.0, %v2734_v3 }
 0x715   : >> { %v2672_v61 = vpop.f32.mrf.mxu0 }
 0x716   : >> { %v2673_v41 = vadd.f32 %v2672_v61, %v2641_v16  ;;  %v2736_v61 = vmul.f32 (%p2166_p11), %v3359_v2, %v2735_v6 }
 0x718   : >> { %v2684_v40 = vsel %vm983_vm0, %v2673_v41, -inf  ;;  %v2802_v41 = vld [vmem:[%s4336_s1 + $0x10] sm:$0xff] (%p2166_p11) }
 0x719   : >> { %v2685_v23 = vrot.slane %v2684_v40, 4 }
 0x71b   : >> { %v2686_v25 = vmax.f32 %v2684_v40, %v2685_v23 }
 0x71d   : >> { %v2675_v38 = vpop.f32.mrf.mxu0  ;;  %v2687_v35 = vrot.slane %v2686_v25, 2 }
 0x71e   : >> { %v2676_v47 = vadd.f32 %v2675_v38, %v2641_v16  ;;  %v2803_v38 = vld [vmem:[%s4336_s1 + $0x18] sm:$0xff] (%p2166_p11) }
 0x71f   : >> { %v2688_v34 = vmax.f32 %v2686_v25, %v2687_v35  ;;  %2846 = vmatpush.msra.mxu1 (%p2166_p11), %v2803_v38 }
 0x720   : >> { %v2691_v10 = vsel %vm983_vm0, %v2676_v47, -inf  ;;  %v2801_v47 = vld [vmem:[%s4336_s1 + $0x8] sm:$0xff] (%p2166_p11) }
 0x721   : >> { %v2692_v11 = vrot.slane %v2691_v10, 4  ;;  %v2689_v42 = vrot.slane %v2688_v34, 1  ;;  %2847 = vmatpush.msra.mxu1 (%p2166_p11), %v2802_v41 }
 0x723   : >> { %v2693_v17 = vmax.f32 %v2691_v10, %v2692_v11  ;;  %v2690_v19 = vmax.f32 %v2688_v34, %v2689_v42  ;;  %v2800_v11 = vld [vmem:[%s4336_s1] sm:$0xff] (%p2166_p11)  ;;  %2848 = vmatpush.msra.mxu1 (%p2166_p11), %v2801_v47  ;;  %s4339_s1 = sld [smem:[#allocation19_spill]] (%p2166_p11) }
 0x725   : >> { %v2678_v7 = vpop.f32.mrf.mxu0  ;;  %v2694_v28 = vrot.slane %v2693_v17, 2  ;;  %2849 = vmatpush.msra.mxu1 (%p2166_p11), %v2800_v11 }
 0x726   : >> { %v2679_v15 = vadd.f32 %v2678_v7, %v2641_v16 }
 0x727   : >> { %v2695_v32 = vmax.f32 %v2693_v17, %v2694_v28 }
 0x728   : >> { %v2698_v62 = vsel %vm983_vm0, %v2679_v15, -inf }
 0x729   : >> { %v2699_v27 = vrot.slane %v2698_v62, 4  ;;  %v2696_v36 = vrot.slane %v2695_v32, 1 }
 0x72b   : >> { %v2700_v1 = vmax.f32 %v2698_v62, %v2699_v27  ;;  %v2697_v4 = vmax.f32 %v2695_v32, %v2696_v36 }
 0x72d   : >> { %v2701_v30 = vrot.slane %v2700_v1, 2  ;;  %v2681_v31 = vpop.f32.mrf.mxu0  ;;  %v2717_v5 = vsel %vm2716_vm4, %v2697_v4, %v2690_v19 }
 0x72e   : >> { %v2682_v49 = vadd.f32 %v2681_v31, %v2641_v16  ;;  %v2737_v16 = vadd.f32 (%p2166_p11), %v3359_v2, %v2736_v61 }
 0x72f   : >> { %v2702_v33 = vmax.f32 %v2700_v1, %v2701_v30 }
 0x730   : >> { %v2705_v51 = vsel %vm983_vm0, %v2682_v49, -inf  ;;  %v4217_v18 = vsel (%p2166_p11), %vm2738_vm8, %v3359_v2, %v2737_v16  ;;  %v3350_v49 = vld [vmem:[%s4337_s3] ss:$0 sm:$0xff] (%p2166_p11)  ;;  %s3155_s3 = sshll.u32 (%p2166_p11), %s3656_s0, 3 }
 0x731   : >> { %v2706_v45 = vrot.slane %v2705_v51, 4  ;;  %v2703_v39 = vrot.slane %v2702_v33, 1  ;;  %v3355_v16 = vld [vmem:[%s4341_s4] ss:$0 sm:$0xff] (%p2166_p11)  ;;  %s4344_s4 = scalar_lea.vmem (%p2166_p11), [#allocation4], %s3693_s23 }
 0x732   : > { %s2944_s6 = sshll.u32 (%p2166_p11), %s4344_s4, 4  ;;  %s4345_s0 = smov (%p2166_p11), %s4344_s4  ;;  %s2945_s6 = int_to_ptr.vmem [resolvable:$true] %s2944_s6 }
 0x733   : >> { %v2707_v46 = vmax.f32 %v2705_v51, %v2706_v45  ;;  %v2704_v14 = vmax.f32 %v2702_v33, %v2703_v39 }
 0x735   : >> { %v2708_v44 = vrot.slane %v2707_v46, 2  ;;  %v2719_v22 = vsel %vm2718_vm5, %v2704_v14, %v2717_v5  ;;  %v3353_v14 = vld [vmem:[%s4340_s5] ss:$0 sm:$0xff] (%p2166_p11)  ;;  %v2867_v5 = vld [vmem:[%s3623_s27 + $0x38] sm:$0xff] (%p2166_p11)  ;;  %s4342_s5 = sld [smem:[#allocation21_spill]] (%p2166_p11) }
 0x736   : > { %2880 = vmatpush.msra.mxu2 (%p2166_p11), %v2867_v5 }
 0x737   : >> { %v2709_v12 = vmax.f32 %v2707_v46, %v2708_v44  ;;  %v3352_v44 = vld [vmem:[%s4339_s1] ss:$0 sm:$0xff] (%p2166_p11)  ;;  %s4343_s1 = sld [smem:[#allocation22_spill]] (%p2166_p11) }
 0x739   : >> { %v2710_v53 = vrot.slane %v2709_v12, 1 }
 0x73a   : > { %2168 = sbr.rel (!%p2166_p11) target bundleno = 1161 (0x489), region = 220 }
 0x73b   : >> { %v2711_v8 = vmax.f32 %v2709_v12, %v2710_v53 }
 0x73d   : >> { %v2721_v24 = vsel %vm2720_vm6, %v2711_v8, %v2719_v22  ;;  %v2866_v8 = vld [vmem:[%s3623_s27 + $0x30] sm:$0xff] (%p2166_p11)  ;;  %v2865_v22 = vld [vmem:[%s3623_s27 + $0x28] sm:$0xff] (%p2166_p11) }
 0x73e   : >> { %2725 = vst.msk [vmem:[%s2723_s28] sm:$0xf] %vm2724_vm7, %v2721_v24  ;;  %s4338_s28 = sld [smem:[#allocation18_spill]] (%p2166_p11)  ;;  %2881 = vmatpush.msra.mxu2 (%p2166_p11), %v2866_v8  ;;  %v2864_v24 = vld [vmem:[%s3623_s27 + $0x20] sm:$0xff] (%p2166_p11) }
 0x740   : > { %2882 = vmatpush.msra.mxu2 %v2865_v22 }
 0x742   : > { %2883 = vmatpush.msra.mxu2 %v2864_v24 }
 0x744   : > { %v3351_v34 = vld [vmem:[%s4338_s28] ss:$0 sm:$0xff]  ;;  %s2942_s28 = scalar_lea.hbm %s3633_s19, %s3155_s3 }
 0x745   : > { %v2726_v29 = vld [vmem:[#allocation2] sm:$0xff]  ;;  %s2946_s8 = sshll.u32 %s2942_s28, 4  ;;  %s2947_s8 = int_to_ptr.hbm [resolvable:$true] %s2946_s8 }
 0x746   : > { %v2727_v9 = vadd.f32 %v2726_v29, %v3707_v13  ;;  %v2863_v29 = vld [vmem:[%s3623_s27 + $0x18] sm:$0xff] }
 0x747   : > { %2884 = vmatpush.msra.mxu2 %v2863_v29 }
 0x748   : > { %v2730_v48 = vsel %vm983_vm0, %v2727_v9, 0.0 }
 0x749   : > { %2731 = vadd.xlane.f32.xlu0 %v2730_v48  ;;  %v2861_v48 = vld [vmem:[%s3623_s27 + $0x8] sm:$0xff] }
 0x751   : > { %2771 = vadd.xlane.f32.xlu0 %v2770_v21  ;;  %v3354_v21 = vld [vmem:[%s3618_s12] ss:$0 sm:$0xff] }
 0x7bc   : > { %v2732_v20 = vpop.xlane.xlu0 %2731 }
 0x7bd   : > { %v2740_v26 = vmul.f32 %v4217_v18, %v2732_v20 }
 0x7bf   : > { %v2741_v13 = vsub.f32 %v2727_v9, %v2740_v26  ;;  %v2862_v9 = vld [vmem:[%s3623_s27 + $0x10] sm:$0xff] }
 0x7c0   : > { %2885 = vmatpush.msra.mxu2 %v2862_v9 }
 0x7c1   : > { %v2742_v37 = vmul.f32 %v2741_v13, %v2741_v13 }
 0x7c2   : > { %2886 = vmatpush.msra.mxu2 %v2861_v48 }
 0x7c3   : > { %v2743_v43 = vsel %vm983_vm0, %v2742_v37, 0.0 }
 0x7c4   : > { %2744 = vadd.xlane.f32.xlu1 %v2743_v43  ;;  %v2772_v52 = vpop.xlane.xlu0 %2771 }
 0x7c5   : > { %v2773_v54 = vmul.f32 %v2772_v52, %v4217_v18 }
 0x7c7   : > { %v2774_v55 = vsub.f32 %v2767_v50, %v2773_v54  ;;  %v2860_v50 = vld [vmem:[%s3623_s27] sm:$0xff] }
 0x7c8   : > { %2887 = vmatpush.msra.mxu2 %v2860_v50 }
 0x7c9   : > { %v2775_v56 = vmul.f32 %v2774_v55, %v2774_v55 }
 0x7cb   : > { %v2776_v57 = vsel %vm983_vm0, %v2775_v56, 0.0 }
 0x7cc   : > { %2777 = vadd.xlane.f32.xlu1 %v2776_v57 }
 0x837   : > { %v2745_v10 = vpop.xlane.xlu1 %2744 }
 0x838   : > { %v2746_v40 = vmul.f32 %v2745_v10, %v4217_v18 }
 0x83a   : > { %v2747_v23 = vadd.f32 1e-05, %v2746_v40  ;;  %v3356_v40 = vld [vmem:[%s4342_s5] ss:$0 sm:$0xff]  ;;  %s3380_s5 = sshra.s32 %s2947_s8, 4  ;;  %s3381_s5 = int_to_ptr.hbm [resolvable:$true] %s3380_s5 }
 0x83b   : > { %s3382_s3 = scalar_lea.hbm %s3381_s5, 8  ;;  %p3387_p1 = scmp.lt.s32.totalorder %s3381_s5, %s3633_s19 }
 0x83c   : > { %3360 = vrsqrt.f32 %v2747_v23  ;;  %vm2754_vm10 = vweird.f32 %v2747_v23  ;;  %p3383_p12 = scmp.ne.s32.totalorder %s3381_s5, %s3382_s3 }
 0x83e   : > { %p3384_p13 = pnand %p3383_p12, %p3673_p5 }
 0x83f   : > { %v2778_v7 = vpop.xlane.xlu1 %2777 }
 0x840   : > { %v2779_v15 = vmul.f32 %v2778_v7, %v4217_v18  ;;  %p3385_p0 = pneg %p3384_p13 }
 0x842   : > { %v3361_v17 = vpop.eup %3360  ;;  %v2780_v62 = vadd.f32 1e-05, %v2779_v15 }
 0x843   : > { %v2749_v25 = vmul.f32 %v3361_v17, %v2747_v23  ;;  %vm2755_vm9 = vweird.f32 %v3361_v17  ;;  %v3357_v23 = vld [vmem:[%s4343_s1] ss:$0 sm:$0xff]  ;;  %s3386_s1 = scalar_lea.hbm %s3633_s19, 16 }
 0x844   : > { %3362 = vrsqrt.f32 %v2780_v62  ;;  %vm2756_vm11 = vmor %vm2754_vm10, %vm2755_vm9  ;;  %vm2787_vm13 = vweird.f32 %v2780_v62  ;;  %p3388_p2 = scmp.lt.s32.totalorder %s3386_s1, %s3382_s3 }
 0x845   : > { %v2750_v27 = vmul.f32 %v3361_v17, %v2749_v25 }
 0x846   : > { %p3389_p3 = por %p3388_p2, %p3387_p1 }
 0x847   : > { %v2751_v28 = vmul.f32 0.5, %v2750_v27 }
 0x848   : > { %p3390_p4 = pnand %p3389_p3, %p3385_p0 }
 0x849   : > { %v2752_v1 = vsub.f32 1.5, %v2751_v28 }
 0x84a   : > { %v3363_v35 = vpop.eup %3362 }
 0x84b   : > { %v2753_v30 = vmul.f32 %v3361_v17, %v2752_v1  ;;  %v2782_v31 = vmul.f32 %v3363_v35, %v2780_v62  ;;  %vm2788_vm12 = vweird.f32 %v3363_v35 }
 0x84c   : > { %vm2789_vm14 = vmor %vm2787_vm13, %vm2788_vm12 }
 0x84d   : > { %v2783_v32 = vmul.f32 %v3363_v35, %v2782_v31  ;;  %v2757_v33 = vsel %vm2756_vm11, %v3361_v17, %v2753_v30 }
 0x84e   : > { %v2758_v51 = vmul.f32 %v2757_v33, %v2741_v13 }
 0x84f   : > { %v2784_v45 = vmul.f32 0.5, %v2783_v32 }
 0x850   : > { %v2762_v36 = vmul.f32 %v3350_v49, %v2758_v51 }
 0x851   : > { %v2785_v46 = vsub.f32 1.5, %v2784_v45 }
 0x852   : > { %v2766_v39 = vadd.f32 %v3351_v34, %v2762_v36 }
 0x853   : > { %v2786_v42 = vmul.f32 %v3363_v35, %v2785_v46 }
 0x854   : > { %3151 = vmatmul.msk.f32.vlgmr.msra.gmra.mxu0 %vm983_vm0, %v2766_v39 }
 0x855   : > { %v2790_v4 = vsel %vm2789_vm14, %v3363_v35, %v2786_v42 }
 0x856   : > { %v2791_v12 = vmul.f32 %v2790_v4, %v2774_v55 }
 0x858   : > { %v2795_v19 = vmul.f32 %v3352_v44, %v2791_v12 }
 0x85a   : > { %v2799_v53 = vadd.f32 %v3353_v14, %v2795_v19 }
 0x85c   : > { %3152 = vmatmul.msk.f32.vlgmr.msra.gmra.mxu1 %vm983_vm0, %v2799_v53 }
 0x8d1   : > { %v2828_v0 = vpop.f32.mrf.mxu0 }
 0x8d9   : > { %v2851_v2 = vpop.f32.mrf.mxu1 }
 0x8da   : > { %v2852_v3 = vadd.f32 %v2851_v2, %v2828_v0 }
 0x8dc   : > { %v2858_v6 = vadd.f32 %v3354_v21, %v2852_v3 }
 0x8de   : > { %v2859_v61 = vmax.f32 %v2858_v6, 0.0 }
 0x8e0   : > { %3153 = vmatmul.msk.f32.vlgmr.msra.gmra.mxu2 %vm2868_vm15, %v2859_v61 }
 0x963   : > { %v2889_v20 = vpop.f32.mrf.mxu2 }
 0x964   : > { %v2892_v26 = vadd.f32 %v2889_v20, %v2799_v53 }
 0x966   : > { %v2897_v13 = vadd.f32 %v3355_v16, %v2892_v26 }
 0x968   : > { %v2900_v37 = vsel %vm983_vm0, %v2897_v13, 0.0 }
 0x969   : > { %2901 = vadd.xlane.f32.xlu2 %v2900_v37 }
 0x9dc   : > { %v2902_v43 = vpop.xlane.xlu2 %2901 }
 0x9dd   : > { %v2903_v52 = vmul.f32 %v2902_v43, %v4217_v18 }
 0x9df   : > { %v2904_v54 = vsub.f32 %v2897_v13, %v2903_v52 }
 0x9e1   : > { %v2905_v55 = vmul.f32 %v2904_v54, %v2904_v54 }
 0x9e3   : > { %v2906_v56 = vsel %vm983_vm0, %v2905_v55, 0.0 }
 0x9e4   : > { %2907 = vadd.xlane.f32.xlu2 %v2906_v56 }
 0xa57   : > { %v2908_v57 = vpop.xlane.xlu2 %2907 }
 0xa58   : > { %v2909_v58 = vmul.f32 %v2908_v57, %v4217_v18 }
 0xa5a   : > { %v2910_v59 = vadd.f32 1e-05, %v2909_v58 }
 0xa5c   : > { %3364 = vrsqrt.f32 %v2910_v59  ;;  %vm2917_vm2 = vweird.f32 %v2910_v59 }
 0xa62   : > { %v3365_v60 = vpop.eup %3364 }
 0xa63   : > { %v2912_v63 = vmul.f32 %v3365_v60, %v2910_v59  ;;  %vm2918_vm1 = vweird.f32 %v3365_v60 }
 0xa64   : > { %vm2919_vm3 = vmor %vm2917_vm2, %vm2918_vm1 }
 0xa65   : > { %v2913_v38 = vmul.f32 %v3365_v60, %v2912_v63 }
 0xa67   : > { %v2914_v41 = vmul.f32 0.5, %v2913_v38 }
 0xa69   : > { %v2915_v47 = vsub.f32 1.5, %v2914_v41 }
 0xa6b   : > { %v2916_v10 = vmul.f32 %v3365_v60, %v2915_v47 }
 0xa6d   : > { %v2920_v18 = vsel %vm2919_vm3, %v3365_v60, %v2916_v10 }
 0xa6e   : > { %v2921_v11 = vmul.f32 %v2920_v18, %v2904_v54 }
 0xa70   : > { %v2925_v7 = vmul.f32 %v3356_v40, %v2921_v11 }
 0xa72   : > { %v2929_v15 = vadd.f32 %v3357_v23, %v2925_v7 }
 0xa74   : > { %2930 = vst.msk [vmem:[%s4345_s0] sm:$0xff] %vm983_vm0, %v2929_v15 }
 0xa75   : > { %3393 = shalt.err (!%p3390_p4)
}
 0xa76   : > { %3161 = dma.vmem_to_hbm [thread:$0]  (%p3673_p5), %s2945_s6, 128, %s2947_s8, %s2932_s11  }
 0xa77 PF: > { %p3167_p7 = scmp.ge.s32.totalorder %s3432_s22, 2  ;;  %s2958_s9 = sand.u32 1, %s3420_s15  }
 0xa78   : > { %s2959_s4 = scalar_lea.sflag [#allocation5], %s2958_s9 }
 0xa79   : > { %p3164_p8 = pnand %p3167_p7, %p3677_p6 }
 0xa7b   : > { %p3165_p9 = pneg %p3164_p8 }
 0xa7d   : > { %3415 = dma.done.wait (%p3165_p9), %s2959_s4, 128  }
 0xa7e   : > { %3417 = vsyncadd (%p3165_p9), %s2959_s4, 4294967168  ;;  %p71_p10 = scmp.ge.s32.totalorder %s3660_s26, 4   ;;  %s4347_s15 = smov %s3424_s16 }
 0xa7f   : > { %s4348_s16 = smov %s3428_s18  ;;  %s4349_s18 = smov %s3671_s2 }
 0xa80   : > { %s4350_s22 = smov %s3660_s26  ;;  %73 = sbr.rel (!%p71_p10) target bundleno = 57 (0x39), region = 231 }
 0xa85   :  { %2965 = vsyncpa [#allocation5], 1 }
 0xa86   :  { %2967 = vsyncpa [#allocation5 + $0x1], 1 }

</bundles_post_ra>
